<compile_context>
chip_gen: v7x
topology: tpu7x:2x2x1
jax: 0.10.0
libtpu: 0.0.40
codegen_flags: <defaults>
</compile_context>

<pallas_src>
import functools

import jax
import jax.numpy as jnp
from jax.experimental import pallas as pl
from jax.experimental.pallas import tpu as pltpu

LANE = 128


# ----------------------------- Pallas kernels ------------------------------ #

def _sage_kernel(a_ref, hk_ref, hs_ref, wcat_ref, b_ref, o_ref, acc_ref, *, apply_relu):
    """One SAGEConv (mean) layer tile: accumulate A@h over k, finalize with fused W_cat matmul."""
    k = pl.program_id(1)

    @pl.when(k == 0)
    def _():
        acc_ref[...] = jnp.zeros_like(acc_ref)

    # neighbor mean aggregation chunk: (TM, TK) @ (TK, F_in) in bf16, f32 accumulate
    acc_ref[...] += jnp.dot(a_ref[...], hk_ref[...], preferred_element_type=jnp.float32)

    @pl.when(k == pl.num_programs(1) - 1)
    def _():
        # fuse self + neighbor matmuls: [h_self | h_neigh] @ [W_self; W_neigh]  (depth 2*F_in)
        hc = jnp.concatenate(
            [hs_ref[...], acc_ref[...].astype(jnp.bfloat16)], axis=-1)
        out = jnp.dot(hc, wcat_ref[...], preferred_element_type=jnp.float32) + b_ref[...]
        if apply_relu:
            out = jnp.maximum(out, 0.0)
        o_ref[...] = out.astype(o_ref.dtype)


def _sage_fc_kernel(a_ref, hk_ref, hs_ref, wcat_ref, b_ref, wfc_ref, bfc_ref, o_ref, acc_ref):
    """Last SAGEConv layer (no relu) with the final nn.Linear fused in."""
    k = pl.program_id(1)

    @pl.when(k == 0)
    def _():
        acc_ref[...] = jnp.zeros_like(acc_ref)

    acc_ref[...] += jnp.dot(a_ref[...], hk_ref[...], preferred_element_type=jnp.float32)

    @pl.when(k == pl.num_programs(1) - 1)
    def _():
        hc = jnp.concatenate(
            [hs_ref[...], acc_ref[...].astype(jnp.bfloat16)], axis=-1)
        h_last = jnp.dot(hc, wcat_ref[...], preferred_element_type=jnp.float32) + b_ref[...]
        out = jnp.dot(h_last.astype(jnp.bfloat16), wfc_ref[...],
                      preferred_element_type=jnp.float32) + bfc_ref[...]
        o_ref[...] = out.astype(o_ref.dtype)


# ------------------------------ JAX wrappers ------------------------------- #

def sage_layer(a, h, w_cat, bias, *, apply_relu, out_dtype,
               w_fc=None, b_fc=None, tm=128, tk=128):
    """One tiled SAGE layer. If w_fc/b_fc given, the final linear is fused (and no relu)."""
    n = a.shape[0]
    f_in = h.shape[1]
    f_out = w_cat.shape[1]
    fuse_fc = w_fc is not None
    out_cols = w_fc.shape[1] if fuse_fc else f_out
    assert n % tm == 0 and n % tk == 0, "N must be a multiple of the tile sizes"

    grid = (n // tm, n // tk)   # (row blocks: parallel, neighbor blocks: reduction, last)

    in_specs = [
        pl.BlockSpec((tm, tk), lambda i, k: (i, k)),           # A tile (streamed)
        pl.BlockSpec((tk, f_in), lambda i, k: (k, 0)),         # h rows for neighbor reduction
        pl.BlockSpec((tm, f_in), lambda i, k: (i, 0)),         # h self rows (resident across k)
        pl.BlockSpec((2 * f_in, f_out), lambda i, k: (0, 0)),  # stacked [W_self; W_neigh] (resident)
        pl.BlockSpec((1, f_out), lambda i, k: (0, 0)),         # bias (resident)
    ]
    inputs = [a, h, h, w_cat, bias]
    if fuse_fc:
        in_specs += [
            pl.BlockSpec((f_out, out_cols), lambda i, k: (0, 0)),  # W_fc (resident)
            pl.BlockSpec((1, out_cols), lambda i, k: (0, 0)),      # b_fc (resident)
        ]
        inputs += [w_fc, b_fc]
        kernel = _sage_fc_kernel
    else:
        kernel = functools.partial(_sage_kernel, apply_relu=apply_relu)

    # advisory cost hint for XLA scheduling
    flops = 2 * n * n * f_in + 2 * n * (2 * f_in) * f_out
    bytes_accessed = (n * n * 2                       # A (bf16)
                      + n * f_in * 2 * (grid[0] + 1)  # h streamed per row-block + self rows
                      + 2 * f_in * f_out * 2          # W_cat
                      + n * out_cols * jnp.dtype(out_dtype).itemsize)
    if fuse_fc:
        flops += 2 * n * f_out * out_cols
        bytes_accessed += f_out * out_cols * 2 + out_cols * 4

    return pl.pallas_call(
        kernel,
        out_shape=jax.ShapeDtypeStruct((n, out_cols), out_dtype),
        grid_spec=pltpu.PrefetchScalarGridSpec(
            num_scalar_prefetch=0,
            grid=grid,
            in_specs=in_specs,
            out_specs=pl.BlockSpec((tm, out_cols), lambda i, k: (i, 0)),
            scratch_shapes=[pltpu.VMEM((tm, f_in), jnp.float32)],
        ),
        compiler_params=pltpu.CompilerParams(
            dimension_semantics=("parallel", "arbitrary"),
            vmem_limit_bytes=32 * 1024 * 1024,   # explicit; fits v5e/v6e/v7x scoped budgets
        ),
        cost_estimate=pl.CostEstimate(flops=flops, transcendentals=0,
                                      bytes_accessed=bytes_accessed),
    )(*inputs)


def graphsage_forward(a_norm, h0, params, *, tm=128, tk=128):
    """params = ([(W_cat_l, bias_l), ...], (W_fc_padded, b_fc_padded)); h0 is bf16, lane-padded."""
    sage_params, (w_fc, b_fc) = params
    h = h0  # dropout p -> identity (inference)
    n_layers = len(sage_params)
    for l, (w_cat, b) in enumerate(sage_params):
        if l == n_layers - 1:
            h = sage_layer(a_norm, h, w_cat, b, apply_relu=False,
                           out_dtype=jnp.float32, w_fc=w_fc, b_fc=b_fc, tm=tm, tk=tk)
        else:
            h = sage_layer(a_norm, h, w_cat, b, apply_relu=True,
                           out_dtype=jnp.bfloat16, tm=tm, tk=tk)
    return h  # (N, padded classes); caller slices logical class columns


# ------------------------------ Param / graph ------------------------------ #

def _pad_rows(w, rows):
    return jnp.pad(w, ((0, rows - w.shape[0]), (0, 0))) if rows > w.shape[0] else w


def _pad_cols(w, cols):
    return jnp.pad(w, ((0, 0), (0, cols - w.shape[1]))) if cols > w.shape[1] else w


def _round_up(x, m):
    return ((x + m - 1) // m) * m


def make_params(key, in_feats, n_hidden, n_classes, n_layers):
    """Kernel-form params: stacked (2*F_in_pad, F_out) bf16 weights, f32 bias, lane-padded fc."""
    sage_params = []
    dims = [in_feats] + [n_hidden] * n_layers
    for l in range(n_layers):
        k1, k2, k3, key = jax.random.split(key, 4)
        fi, fo = dims[l], dims[l + 1]
        fi_p = _round_up(fi, LANE)
        scale = 1.0 / jnp.sqrt(jnp.float32(fi))
        w_self = jax.random.uniform(k1, (fi, fo), jnp.float32, -scale, scale)
        w_neigh = jax.random.uniform(k2, (fi, fo), jnp.float32, -scale, scale)
        bias = jax.random.uniform(k3, (1, fo), jnp.float32, -scale, scale)
        w_cat = jnp.concatenate([_pad_rows(w_self, fi_p), _pad_rows(w_neigh, fi_p)], axis=0)
        sage_params.append((w_cat.astype(jnp.bfloat16), bias))
    k1, k2, _ = jax.random.split(key, 3)
    c_pad = _round_up(n_classes, LANE)
    scale = 1.0 / jnp.sqrt(jnp.float32(n_hidden))
    w_fc = jax.random.uniform(k1, (n_hidden, n_classes), jnp.float32, -scale, scale)
    b_fc = jax.random.uniform(k2, (1, n_classes), jnp.float32, -scale, scale)
    return sage_params, (_pad_cols(w_fc, c_pad).astype(jnp.bfloat16), _pad_cols(b_fc, c_pad))


def make_graph(key, n_nodes, avg_deg=4):
    """Random directed graph as dense adjacency, row-normalized (mean aggregation)."""
    p = avg_deg / n_nodes
    adj = (jax.random.uniform(key, (n_nodes, n_nodes)) < p).astype(jnp.float32)
    adj = adj * (1.0 - jnp.eye(n_nodes, dtype=jnp.float32))   # self handled by fc_self
    deg = jnp.maximum(jnp.sum(adj, axis=1, keepdims=True), 1.0)
    return adj / deg


# -------------------------------- Reference -------------------------------- #

def reference_forward(a_bf16, h0_bf16, params):
    """Pure-JAX reference with the same bf16-operand / f32-accumulate arithmetic as the kernel."""
    def mm(a, b):
        return jnp.dot(a.astype(jnp.bfloat16), b.astype(jnp.bfloat16),
                       preferred_element_type=jnp.float32)

    sage_params, (w_fc, b_fc) = params
    h = h0_bf16
    n_layers = len(sage_params)
    out = None
    for l, (w_cat, b) in enumerate(sage_params):
        h_neigh = mm(a_bf16, h)
        hc = jnp.concatenate([h.astype(jnp.bfloat16), h_neigh.astype(jnp.bfloat16)], axis=-1)
        out = mm(hc, w_cat) + b
        if l != n_layers - 1:
            h = jnp.maximum(out, 0.0).astype(jnp.bfloat16)
        else:
            out = mm(out.astype(jnp.bfloat16), w_fc) + b_fc
    return out


# ---------------------------------- Main ----------------------------------- #

if __name__ == "__main__":
    key = jax.random.PRNGKey(0)
    k_graph, k_feat, k_param = jax.random.split(key, 3)

    N_NODES = 256       # multiple of tile size (128)
    IN_FEATS = 64       # lane-padded to 128 for the kernel
    N_HIDDEN = 128
    N_CLASSES = 8       # lane-padded to 128; logical 8 columns sliced outside the kernel
    N_LAYERS = 2
    TM = TK = 128

    a_norm = make_graph(k_graph, N_NODES)
    a_bf16 = a_norm.astype(jnp.bfloat16)

    x = jax.random.normal(k_feat, (N_NODES, IN_FEATS), jnp.float32)
    x_pad = jnp.pad(x, ((0, 0), (0, _round_up(IN_FEATS, LANE) - IN_FEATS))).astype(jnp.bfloat16)

    params = make_params(k_param, IN_FEATS, N_HIDDEN, N_CLASSES, N_LAYERS)

    fwd = jax.jit(functools.partial(graphsage_forward, tm=TM, tk=TK))
    out_pad = jax.block_until_ready(fwd(a_bf16, x_pad, params))
    out = out_pad[:, :N_CLASSES]

    ref = reference_forward(a_bf16, x_pad, params)[:, :N_CLASSES]
    assert out.shape == (N_NODES, N_CLASSES), out.shape
    assert jnp.allclose(out, ref, atol=1e-3, rtol=1e-3), \
        f"mismatch vs. reference, max abs err = {jnp.max(jnp.abs(out - ref))}"

    print("KERNEL_OK")
</pallas_src>

<mosaic_0001>
module attributes {stable_mosaic.version = 11 : i64} {
  func.func @_sage_kernel(%arg0: i32, %arg1: i32, %arg2: memref<128x128xbf16, #tpu.memory_space<vmem>>, %arg3: memref<128x128xbf16, #tpu.memory_space<vmem>>, %arg4: memref<128x128xbf16, #tpu.memory_space<vmem>>, %arg5: memref<256x128xbf16, #tpu.memory_space<vmem>>, %arg6: memref<1x128xf32, #tpu.memory_space<vmem>>, %arg7: memref<128x128xbf16, #tpu.memory_space<vmem>>, %arg8: memref<128x128xf32, #tpu.memory_space<vmem>>) attributes {dimension_semantics = [#tpu.dimension_semantics<parallel>, #tpu.dimension_semantics<arbitrary>], iteration_bounds = array<i64: 2, 2>, scalar_prefetch = 0 : i64, scratch_operands = 1 : i64, tpu.core_type = #tpu.core_type<tc>, window_params = [{transform_indices = @transform_0, window_bounds = array<i64: 128, 128>}, {transform_indices = @transform_1, window_bounds = array<i64: 128, 128>}, {transform_indices = @transform_2, window_bounds = array<i64: 128, 128>}, {pipeline_mode = #tpu.pipeline_mode<synchronous>, transform_indices = @transform_3, window_bounds = array<i64: 256, 128>}, {pipeline_mode = #tpu.pipeline_mode<synchronous>, transform_indices = @transform_4, window_bounds = array<i64: 1, 128>}, {transform_indices = @transform_5, window_bounds = array<i64: 128, 128>}]} {
    %c0_i32 = arith.constant 0 : i32
    %0 = arith.cmpi eq, %arg1, %c0_i32 : i32
    %1 = arith.extui %0 : i1 to i32
    %c0_i32_0 = arith.constant 0 : i32
    %2 = arith.cmpi ne, %1, %c0_i32_0 : i32
    scf.if %2 {
      %cst_9 = arith.constant 0.000000e+00 : f32
      %12 = vector.broadcast %cst_9 : f32 to vector<128x128xf32>
      %c0_10 = arith.constant 0 : index
      %c0_11 = arith.constant 0 : index
      %13 = vector.load %arg8[%c0_10, %c0_11] : memref<128x128xf32, #tpu.memory_space<vmem>>, vector<128x128xf32>
      tpu.vector_store %arg8[%c0_10, %c0_11], %12 {strides = array<i32>} : memref<128x128xf32, #tpu.memory_space<vmem>>, vector<128x128xf32>,
    } else {
    }
    %c0 = arith.constant 0 : index
    %c0_1 = arith.constant 0 : index
    %3 = vector.load %arg8[%c0, %c0_1] : memref<128x128xf32, #tpu.memory_space<vmem>>, vector<128x128xf32>
    %c0_2 = arith.constant 0 : index
    %c0_3 = arith.constant 0 : index
    %4 = vector.load %arg2[%c0_2, %c0_3] : memref<128x128xbf16, #tpu.memory_space<vmem>>, vector<128x128xbf16>
    %c0_4 = arith.constant 0 : index
    %c0_5 = arith.constant 0 : index
    %5 = vector.load %arg3[%c0_4, %c0_5] : memref<128x128xbf16, #tpu.memory_space<vmem>>, vector<128x128xbf16>
    %cst = arith.constant dense<0.000000e+00> : vector<128x128xf32>
    %6 = tpu.matmul %4, %5, %cst {dimension_numbers = #tpu.dot_dimension_numbers<[1], [0], [0], [1], [0, 0, 1, 1], [], []>} : vector<128x128xbf16>, vector<128x128xbf16>, vector<128x128xf32> -> vector<128x128xf32>
    %7 = arith.addf %3, %6 : vector<128x128xf32>
    %c0_6 = arith.constant 0 : index
    %c0_7 = arith.constant 0 : index
    %8 = vector.load %arg8[%c0_6, %c0_7] : memref<128x128xf32, #tpu.memory_space<vmem>>, vector<128x128xf32>
    tpu.vector_store %arg8[%c0_6, %c0_7], %7 {strides = array<i32>} : memref<128x128xf32, #tpu.memory_space<vmem>>, vector<128x128xf32>,
    %c1_i32 = arith.constant 1 : i32
    %9 = arith.cmpi eq, %arg1, %c1_i32 : i32
    %10 = arith.extui %9 : i1 to i32
    %c0_i32_8 = arith.constant 0 : i32
    %11 = arith.cmpi ne, %10, %c0_i32_8 : i32
    scf.if %11 {
      %c0_9 = arith.constant 0 : index
      %c0_10 = arith.constant 0 : index
      %12 = vector.load %arg4[%c0_9, %c0_10] : memref<128x128xbf16, #tpu.memory_space<vmem>>, vector<128x128xbf16>
      %c0_11 = arith.constant 0 : index
      %c0_12 = arith.constant 0 : index
      %13 = vector.load %arg8[%c0_11, %c0_12] : memref<128x128xf32, #tpu.memory_space<vmem>>, vector<128x128xf32>
      %14 = arith.truncf %13 : vector<128x128xf32> to vector<128x128xbf16>
      %15 = tpu.concatenate %12, %14 in 1 : vector<128x128xbf16>, vector<128x128xbf16> -> vector<128x256xbf16>
      %c0_13 = arith.constant 0 : index
      %c0_14 = arith.constant 0 : index
      %16 = vector.load %arg5[%c0_13, %c0_14] : memref<256x128xbf16, #tpu.memory_space<vmem>>, vector<256x128xbf16>
      %cst_15 = arith.constant dense<0.000000e+00> : vector<128x128xf32>
      %17 = tpu.matmul %15, %16, %cst_15 {dimension_numbers = #tpu.dot_dimension_numbers<[1], [0], [0], [1], [0, 0, 1, 1], [], []>} : vector<128x256xbf16>, vector<256x128xbf16>, vector<128x128xf32> -> vector<128x128xf32>
      %c0_16 = arith.constant 0 : index
      %c0_17 = arith.constant 0 : index
      %18 = vector.load %arg6[%c0_16, %c0_17] : memref<1x128xf32, #tpu.memory_space<vmem>>, vector<1x128xf32>
      %19 = vector.broadcast %18 : vector<1x128xf32> to vector<128x128xf32>
      %20 = arith.addf %17, %19 : vector<128x128xf32>
      %cst_18 = arith.constant 0.000000e+00 : f32
      %21 = vector.broadcast %cst_18 : f32 to vector<128x128xf32>
      %22 = arith.maximumf %20, %21 : vector<128x128xf32>
      %23 = arith.truncf %22 : vector<128x128xf32> to vector<128x128xbf16>
      %c0_19 = arith.constant 0 : index
      %c0_20 = arith.constant 0 : index
      %24 = vector.load %arg7[%c0_19, %c0_20] : memref<128x128xbf16, #tpu.memory_space<vmem>>, vector<128x128xbf16>
      tpu.vector_store %arg7[%c0_19, %c0_20], %23 {strides = array<i32>} : memref<128x128xbf16, #tpu.memory_space<vmem>>, vector<128x128xbf16>,
    } else {
    }
    return
  }
  func.func @transform_0(%arg0: i32, %arg1: i32) -> (i32, i32) {
    %c0_i32 = arith.constant 0 : i32
    return %arg0, %arg1 : i32, i32
  }
  func.func @transform_1(%arg0: i32, %arg1: i32) -> (i32, i32) {
    %c0_i32 = arith.constant 0 : i32
    %c0_i32_0 = arith.constant 0 : i32
    return %arg1, %c0_i32 : i32, i32
  }
  func.func @transform_2(%arg0: i32, %arg1: i32) -> (i32, i32) {
    %c0_i32 = arith.constant 0 : i32
    %c0_i32_0 = arith.constant 0 : i32
    return %arg0, %c0_i32 : i32, i32
  }
  func.func @transform_3(%arg0: i32, %arg1: i32) -> (i32, i32) {
    %c0_i32 = arith.constant 0 : i32
    %c0_i32_0 = arith.constant 0 : i32
    %c0_i32_1 = arith.constant 0 : i32
    return %c0_i32, %c0_i32_0 : i32, i32
  }
  func.func @transform_4(%arg0: i32, %arg1: i32) -> (i32, i32) {
    %c0_i32 = arith.constant 0 : i32
    %c0_i32_0 = arith.constant 0 : i32
    %c0_i32_1 = arith.constant 0 : i32
    return %c0_i32, %c0_i32_0 : i32, i32
  }
  func.func @transform_5(%arg0: i32, %arg1: i32) -> (i32, i32) {
    %c0_i32 = arith.constant 0 : i32
    %c0_i32_0 = arith.constant 0 : i32
    return %arg0, %c0_i32 : i32, i32
  }
}

module attributes {stable_mosaic.version = 11 : i64} {
  func.func @_sage_fc_kernel(%arg0: i32, %arg1: i32, %arg2: memref<128x128xbf16, #tpu.memory_space<vmem>>, %arg3: memref<128x128xbf16, #tpu.memory_space<vmem>>, %arg4: memref<128x128xbf16, #tpu.memory_space<vmem>>, %arg5: memref<256x128xbf16, #tpu.memory_space<vmem>>, %arg6: memref<1x128xf32, #tpu.memory_space<vmem>>, %arg7: memref<128x128xbf16, #tpu.memory_space<vmem>>, %arg8: memref<1x128xf32, #tpu.memory_space<vmem>>, %arg9: memref<128x128xf32, #tpu.memory_space<vmem>>, %arg10: memref<128x128xf32, #tpu.memory_space<vmem>>) attributes {dimension_semantics = [#tpu.dimension_semantics<parallel>, #tpu.dimension_semantics<arbitrary>], iteration_bounds = array<i64: 2, 2>, scalar_prefetch = 0 : i64, scratch_operands = 1 : i64, tpu.core_type = #tpu.core_type<tc>, window_params = [{transform_indices = @transform_0, window_bounds = array<i64: 128, 128>}, {transform_indices = @transform_1, window_bounds = array<i64: 128, 128>}, {transform_indices = @transform_2, window_bounds = array<i64: 128, 128>}, {pipeline_mode = #tpu.pipeline_mode<synchronous>, transform_indices = @transform_3, window_bounds = array<i64: 256, 128>}, {pipeline_mode = #tpu.pipeline_mode<synchronous>, transform_indices = @transform_4, window_bounds = array<i64: 1, 128>}, {pipeline_mode = #tpu.pipeline_mode<synchronous>, transform_indices = @transform_5, window_bounds = array<i64: 128, 128>}, {pipeline_mode = #tpu.pipeline_mode<synchronous>, transform_indices = @transform_6, window_bounds = array<i64: 1, 128>}, {transform_indices = @transform_7, window_bounds = array<i64: 128, 128>}]} {
    %c0_i32 = arith.constant 0 : i32
    %0 = arith.cmpi eq, %arg1, %c0_i32 : i32
    %1 = arith.extui %0 : i1 to i32
    %c0_i32_0 = arith.constant 0 : i32
    %2 = arith.cmpi ne, %1, %c0_i32_0 : i32
    scf.if %2 {
      %cst_9 = arith.constant 0.000000e+00 : f32
      %12 = vector.broadcast %cst_9 : f32 to vector<128x128xf32>
      %c0_10 = arith.constant 0 : index
      %c0_11 = arith.constant 0 : index
      %13 = vector.load %arg10[%c0_10, %c0_11] : memref<128x128xf32, #tpu.memory_space<vmem>>, vector<128x128xf32>
      tpu.vector_store %arg10[%c0_10, %c0_11], %12 {strides = array<i32>} : memref<128x128xf32, #tpu.memory_space<vmem>>, vector<128x128xf32>,
    } else {
    }
    %c0 = arith.constant 0 : index
    %c0_1 = arith.constant 0 : index
    %3 = vector.load %arg10[%c0, %c0_1] : memref<128x128xf32, #tpu.memory_space<vmem>>, vector<128x128xf32>
    %c0_2 = arith.constant 0 : index
    %c0_3 = arith.constant 0 : index
    %4 = vector.load %arg2[%c0_2, %c0_3] : memref<128x128xbf16, #tpu.memory_space<vmem>>, vector<128x128xbf16>
    %c0_4 = arith.constant 0 : index
    %c0_5 = arith.constant 0 : index
    %5 = vector.load %arg3[%c0_4, %c0_5] : memref<128x128xbf16, #tpu.memory_space<vmem>>, vector<128x128xbf16>
    %cst = arith.constant dense<0.000000e+00> : vector<128x128xf32>
    %6 = tpu.matmul %4, %5, %cst {dimension_numbers = #tpu.dot_dimension_numbers<[1], [0], [0], [1], [0, 0, 1, 1], [], []>} : vector<128x128xbf16>, vector<128x128xbf16>, vector<128x128xf32> -> vector<128x128xf32>
    %7 = arith.addf %3, %6 : vector<128x128xf32>
    %c0_6 = arith.constant 0 : index
    %c0_7 = arith.constant 0 : index
    %8 = vector.load %arg10[%c0_6, %c0_7] : memref<128x128xf32, #tpu.memory_space<vmem>>, vector<128x128xf32>
    tpu.vector_store %arg10[%c0_6, %c0_7], %7 {strides = array<i32>} : memref<128x128xf32, #tpu.memory_space<vmem>>, vector<128x128xf32>,
    %c1_i32 = arith.constant 1 : i32
    %9 = arith.cmpi eq, %arg1, %c1_i32 : i32
    %10 = arith.extui %9 : i1 to i32
    %c0_i32_8 = arith.constant 0 : i32
    %11 = arith.cmpi ne, %10, %c0_i32_8 : i32
    scf.if %11 {
      %c0_9 = arith.constant 0 : index
      %c0_10 = arith.constant 0 : index
      %12 = vector.load %arg4[%c0_9, %c0_10] : memref<128x128xbf16, #tpu.memory_space<vmem>>, vector<128x128xbf16>
      %c0_11 = arith.constant 0 : index
      %c0_12 = arith.constant 0 : index
      %13 = vector.load %arg10[%c0_11, %c0_12] : memref<128x128xf32, #tpu.memory_space<vmem>>, vector<128x128xf32>
      %14 = arith.truncf %13 : vector<128x128xf32> to vector<128x128xbf16>
      %15 = tpu.concatenate %12, %14 in 1 : vector<128x128xbf16>, vector<128x128xbf16> -> vector<128x256xbf16>
      %c0_13 = arith.constant 0 : index
      %c0_14 = arith.constant 0 : index
      %16 = vector.load %arg5[%c0_13, %c0_14] : memref<256x128xbf16, #tpu.memory_space<vmem>>, vector<256x128xbf16>
      %cst_15 = arith.constant dense<0.000000e+00> : vector<128x128xf32>
      %17 = tpu.matmul %15, %16, %cst_15 {dimension_numbers = #tpu.dot_dimension_numbers<[1], [0], [0], [1], [0, 0, 1, 1], [], []>} : vector<128x256xbf16>, vector<256x128xbf16>, vector<128x128xf32> -> vector<128x128xf32>
      %c0_16 = arith.constant 0 : index
      %c0_17 = arith.constant 0 : index
      %18 = vector.load %arg6[%c0_16, %c0_17] : memref<1x128xf32, #tpu.memory_space<vmem>>, vector<1x128xf32>
      %19 = vector.broadcast %18 : vector<1x128xf32> to vector<128x128xf32>
      %20 = arith.addf %17, %19 : vector<128x128xf32>
      %21 = arith.truncf %20 : vector<128x128xf32> to vector<128x128xbf16>
      %c0_18 = arith.constant 0 : index
      %c0_19 = arith.constant 0 : index
      %22 = vector.load %arg7[%c0_18, %c0_19] : memref<128x128xbf16, #tpu.memory_space<vmem>>, vector<128x128xbf16>
      %cst_20 = arith.constant dense<0.000000e+00> : vector<128x128xf32>
      %23 = tpu.matmul %21, %22, %cst_20 {dimension_numbers = #tpu.dot_dimension_numbers<[1], [0], [0], [1], [0, 0, 1, 1], [], []>} : vector<128x128xbf16>, vector<128x128xbf16>, vector<128x128xf32> -> vector<128x128xf32>
      %c0_21 = arith.constant 0 : index
      %c0_22 = arith.constant 0 : index
      %24 = vector.load %arg8[%c0_21, %c0_22] : memref<1x128xf32, #tpu.memory_space<vmem>>, vector<1x128xf32>
      %25 = vector.broadcast %24 : vector<1x128xf32> to vector<128x128xf32>
      %26 = arith.addf %23, %25 : vector<128x128xf32>
      %c0_23 = arith.constant 0 : index
      %c0_24 = arith.constant 0 : index
      %27 = vector.load %arg9[%c0_23, %c0_24] : memref<128x128xf32, #tpu.memory_space<vmem>>, vector<128x128xf32>
      tpu.vector_store %arg9[%c0_23, %c0_24], %26 {strides = array<i32>} : memref<128x128xf32, #tpu.memory_space<vmem>>, vector<128x128xf32>,
    } else {
    }
    return
  }
  func.func @transform_0(%arg0: i32, %arg1: i32) -> (i32, i32) {
    %c0_i32 = arith.constant 0 : i32
    return %arg0, %arg1 : i32, i32
  }
  func.func @transform_1(%arg0: i32, %arg1: i32) -> (i32, i32) {
    %c0_i32 = arith.constant 0 : i32
    %c0_i32_0 = arith.constant 0 : i32
    return %arg1, %c0_i32 : i32, i32
  }
  func.func @transform_2(%arg0: i32, %arg1: i32) -> (i32, i32) {
    %c0_i32 = arith.constant 0 : i32
    %c0_i32_0 = arith.constant 0 : i32
    return %arg0, %c0_i32 : i32, i32
  }
  func.func @transform_3(%arg0: i32, %arg1: i32) -> (i32, i32) {
    %c0_i32 = arith.constant 0 : i32
    %c0_i32_0 = arith.constant 0 : i32
    %c0_i32_1 = arith.constant 0 : i32
    return %c0_i32, %c0_i32_0 : i32, i32
  }
  func.func @transform_4(%arg0: i32, %arg1: i32) -> (i32, i32) {
    %c0_i32 = arith.constant 0 : i32
    %c0_i32_0 = arith.constant 0 : i32
    %c0_i32_1 = arith.constant 0 : i32
    return %c0_i32, %c0_i32_0 : i32, i32
  }
  func.func @transform_5(%arg0: i32, %arg1: i32) -> (i32, i32) {
    %c0_i32 = arith.constant 0 : i32
    %c0_i32_0 = arith.constant 0 : i32
    %c0_i32_1 = arith.constant 0 : i32
    return %c0_i32, %c0_i32_0 : i32, i32
  }
  func.func @transform_6(%arg0: i32, %arg1: i32) -> (i32, i32) {
    %c0_i32 = arith.constant 0 : i32
    %c0_i32_0 = arith.constant 0 : i32
    %c0_i32_1 = arith.constant 0 : i32
    return %c0_i32, %c0_i32_0 : i32, i32
  }
  func.func @transform_7(%arg0: i32, %arg1: i32) -> (i32, i32) {
    %c0_i32 = arith.constant 0 : i32
    %c0_i32_0 = arith.constant 0 : i32
    return %arg0, %c0_i32 : i32, i32
  }
}

</mosaic_0001>

<bundles_post_ra>
// kernel: graphsage_forward.2
= control target key start
LH: loop header
LB: loop body
LE: loop exit
PB: predicated region body
PF: predicated region fallthrough
CT: control target
= control target key end

     0   :  { %s2433_s0 = inlined_call_operand.hbm [shape: bf16[256,256], index: 0, kind: input, shape index: {}]   ;;  %s2434_s1 = inlined_call_operand.hbm [shape: bf16[256,128], index: 1, kind: input, shape index: {}, may-alias: {1,2}]   ;;  %s2435_s2 = inlined_call_operand.hbm [shape: bf16[256,128], index: 2, kind: input, shape index: {}, may-alias: {1,2}]   ;;  %s2436_s3 = inlined_call_operand.hbm [shape: bf16[256,128], index: 3, kind: input, shape index: {}]   ;;  %s2437_s4 = inlined_call_operand.vmem [shape: f32[1,128], index: 4, kind: input, shape index: {}]   ;;  %s2438_s5 = inlined_call_operand.vmem [shape: bf16[256,128], index: 5, kind: output, shape index: {}]  }
   0x1   :  { %2457 = sst [smem:[#allocation21_spill]] %s2433_s0 }
   0x2   :  { %2458 = sst [smem:[#allocation22_spill]] %s2434_s1 }
   0x3   :  { %2459 = sst [smem:[#allocation23_spill]] %s2437_s4 }
   0x4   :  { %2460 = sst [smem:[#allocation24_spill]] %s2438_s5 }
   0x5   :  { %10 = vsyncpa [#allocation4], 0 }
   0x6   :  { %12 = vsyncpa [#allocation4 + $0x1], 0 }
   0x7   :  { %13 = vsyncpa [#allocation6], 0 }
   0x8   :  { %15 = vsyncpa [#allocation6 + $0x1], 0 }
   0x9   :  { %16 = vsyncpa [#allocation9], 0  ;;  %s1966_s18 = smov 0   ;;  %s1968_s19 = smov 0  }
   0xa   :  { %s1970_s20 = smov 0   ;;  %s1972_s21 = smov 0  }
   0xb   :  { %s1974_s22 = smov 0   ;;  %s1976_s23 = smov 0  }
   0xc   :  { %s1978_s24 = smov 0   ;;  %s1980_s25 = smov 0  }
   0xd   :  { %s1982_s26 = smov 0   ;;  %s1984_s27 = smov 0  }
   0xe   :  { %s1986_s28 = smov 0   ;;  %s1988_s29 = smov 0  }
   0xf   :  { %s1990_s30 = smov 0   ;;  %s1992_s6 = smov 0  }
  0x10 LB: > { %2461 = sst [smem:[#allocation14_spill]] %s1894_s23  ;;  %s31_s7 = sadd.s32 1, %s1918_s29  ;;  %s1926_s6 = sphi %s1992_s6, %s22_s6   ;;  %s1922_s30 = sphi %s1990_s30, %s2520_s30   ;;  %s1918_s29 = sphi %s1988_s29, %s2519_s29   ;;  %s1914_s28 = sphi %s1986_s28, %s2518_s28   ;;  %s1910_s27 = sphi %s1984_s27, %s2517_s27   ;;  %s1906_s26 = sphi %s1982_s26, %s2516_s26   ;;  %s1902_s25 = sphi %s1980_s25, %s2515_s25   ;;  %s1898_s24 = sphi %s1978_s24, %s2514_s24   ;;  %s1894_s23 = sphi %s1976_s23, %s2513_s23   ;;  %s1890_s22 = sphi %s1974_s22, %s2512_s22   ;;  %s1886_s21 = sphi %s1972_s21, %s2511_s21   ;;  %s1882_s20 = sphi %s1970_s20, %s2510_s20   ;;  %s1878_s19 = sphi %s1968_s19, %s2509_s19   ;;  %s1874_s18 = sphi %s1966_s18, %s2508_s18  }
  0x11   : > { %2462 = sst [smem:[#allocation15_spill]] %s1910_s27  ;;  %s34_s8 = sadd.s32 1, %s1922_s30 }
  0x12   : > { %2463 = sst [smem:[#allocation16_spill]] %s1914_s28  ;;  %p32_p0 = scmp.ge.s32.totalorder %s31_s7, 2 }
  0x13   : > { %p2442_p1 = scmp.eq.s32.totalorder %s1926_s6, 0  ;;  %s69_s9 = sadd.s32 1, %s1894_s23 }
  0x14   : > { %p76_p2 = scmp.ne.s32.totalorder %s1894_s23, %s1890_s22  ;;  %s2522_s7 = smov (%p32_p0, %s31_s7), 0 }
  0x15   : > { %2464 = sst [smem:[#allocation17_spill]] %s2522_s7  ;;  %s2524_s8 = smov (!%p32_p0, %s34_s8), %s1922_s30 }
  0x16   : > { %s39_s10 = ssub.s32 %s1918_s29, %s2522_s7  ;;  %p2049_p3 = por %p76_p2, %p2442_p1 }
  0x17   : > { %p36_p4 = scmp.ge.s32.totalorder %s2524_s8, 2  ;;  %p67_p5 = scmp.eq.s32.totalorder %s39_s10, 0 }
  0x18   : > { %p2441_p9 = scmp.lt.s32.totalorder %s1926_s6, 4  ;;  %s239_s16 = sand.u32 1, %s1926_s6  }
  0x19   : > { %s2526_s8 = smov (%p36_p4, %s2524_s8), 0  ;;  %s241_s17 = sand.u32 1, %s1894_s23  }
  0x1a   : > { %2466 = sst [smem:[#allocation18_spill]] %s2526_s8  ;;  %s2062_s13 = ssub.s32 %s1922_s30, %s2526_s8 }
  0x1b   : > { %s2058_s12 = scalar_select %p67_p5, %s1894_s23, %s69_s9  }
  0x1c   : > { %s40_s14 = sor.u32 %s39_s10, %s2062_s13  ;;  %s1214_s7 = sshll.u32 %s241_s17, 6 }
  0x1d   : > { %2467 = sst [smem:[#allocation19_spill]] %s2058_s12  ;;  %p2066_p8 = scmp.eq.s32.totalorder %s40_s14, 0 }
  0x1e   : > { %s1289_s4 = sshll.u32 %s1918_s29, 10  ;;  %s2469_s1 = sld [smem:[#allocation22_spill]] }
  0x1f   : > { %s2468_s15 = scalar_select %p2066_p8, 1, 0 }
  0x20   : > { %s243_s10 = scalar_lea.vmem [#allocation5], %s1214_s7  ;;  %p2083_p10 = pnand %p2441_p9, %p2049_p3 }
  0x21   : > { %s250_s8 = sshll.u32 %s243_s10, 4  ;;  %s2089_s17 = scalar_lea.sflag [#allocation6], %s239_s16  ;;  %s2087_s8 = int_to_ptr.vmem [resolvable:$true] %s250_s8 }
  0x22   : > { %p1684_p12 = pneg %p2083_p10 }
  0x24   : > { %s2077_s9 = scalar_lea.hbm %s2469_s1, %s1289_s4  ;;  %s1687_s7 = scalar_lea.hbm %s2469_s1, 2048 }
  0x25   : > { %s1682_s4 = scalar_lea.hbm %s2077_s9, 1024  ;;  %p1688_p2 = scmp.lt.u32.totalorder %s2077_s9, %s2469_s1 }
  0x26   : > { %p1683_p11 = scmp.ne.s32.totalorder %s2077_s9, %s1682_s4  ;;  %p1689_p3 = scmp.lt.u32.totalorder %s1687_s7, %s1682_s4 }
  0x27   : > { %p1691_p5 = scmp.lt.u32.totalorder %s1682_s4, %s2077_s9 }
  0x28   : > { %p1685_p13 = pnand %p1684_p12, %p1683_p11  ;;  %p1690_p4 = por %p1689_p3, %p1688_p2 }
  0x2a   : > { %p1686_p0 = pneg %p1685_p13  ;;  %p1692_p7 = por %p1691_p5, %p1690_p4 }
  0x2c   : > { %p1693_p9 = pnand %p1692_p7, %p1686_p0 }
  0x2e   : > { %1696 = shalt.err (!%p1693_p9)
}
  0x2f   : > { %s1697_s16 = scalar_lea.vmem %s2087_s8, 1024  ;;  %s1928_s5 = smov [#allocation5]  }
  0x30   : > { %p1698_p11 = scmp.ne.s32.totalorder %s2087_s8, %s1697_s16  ;;  %s1702_s27 = sshll.u32 %s1928_s5, 4  ;;  %s1703_s27 = int_to_ptr.vmem [resolvable:$false] %s1702_s27 }
  0x31   : > { %s1704_s11 = scalar_lea.vmem %s1703_s27, 2048  ;;  %p1705_p6 = scmp.lt.s32.totalorder %s2087_s8, %s1703_s27 }
  0x32   : > { %p1700_p13 = pnand %p1698_p11, %p1684_p12  ;;  %p1706_p2 = scmp.lt.s32.totalorder %s1704_s11, %s1697_s16 }
  0x34   : > { %p1701_p1 = pneg %p1700_p13  ;;  %p1707_p3 = por %p1706_p2, %p1705_p6 }
  0x36   : > { %p1708_p4 = pnand %p1707_p3, %p1701_p1 }
  0x38   : > { %1711 = shalt.err (!%p1708_p4)
}
  0x39   : > { %s2444_s4 = smov 64   ;;  %s2446_s7 = smov 4  }
  0x3a   : > { %1518 = dma.hbm_to_vmem [thread:$0]  (!%p2083_p10), %s2077_s9, 1024, %s2087_s8, %s2089_s17, %s2444_s4, %s2444_s4, %s2446_s7  }
  0x3b   : > { %s2443_s10 = sadd.s32 4294967295, %s1926_s6   ;;  %p1207_p1 = scmp.ge.s32.totalorder %s1926_s6, 1 }
  0x3c   : > { %p2124_p6 = scmp.eq.s32.totalorder %s2443_s10, 0  ;;  %p187_p7 = scmp.lt.s32.totalorder %s1926_s6, 5 }
  0x3d   : > { %p2472_p9 = scmp.ne.s32.totalorder %s1890_s22, %s1886_s21  ;;  %s1931_s8 = smov [#allocation8]  }
  0x3e   : > { %s2471_s16 = scalar_select %p2124_p6, 1, 0 }
  0x3f   : > { %p2134_p12 = por %p2472_p9, %p2124_p6  ;;  %p2138_p0 = pnand %p1207_p1, %p187_p7 }
  0x40   : > { %s199_s9 = sshll.u32 %s1931_s8, 4  ;;  %s43_s21 = sadd.s32 1, %s1906_s26  ;;  %s200_s9 = int_to_ptr.vmem [resolvable:$true] %s199_s9 }
  0x41   : > { %s2473_s5 = scalar_select %p2134_p12, 1, 0 }
  0x42   : > { %s2475_s14 = scalar_select %p2138_p0, 1, 0 }
  0x43   : > { %2474 = sst [smem:[#allocation20_spill]] %s2473_s5  ;;  %p1508_p10 = pneg %p2138_p0 }
  0x44   : > { %s1712_s4 = scalar_lea.hbm %s2436_s3, 2048 }
  0x45   : > { %p2146_p5 = pnand %p1508_p10, %p2124_p6  ;;  %p1713_p11 = scmp.ne.s32.totalorder %s2436_s3, %s1712_s4 }
  0x46   : > { %p1719_p4 = scmp.lt.u32.totalorder %s1712_s4, %s2436_s3 }
  0x47   : > { %p1714_p13 = pneg %p2146_p5 }
  0x49   : > { %p1715_p2 = pnand %p1714_p13, %p1713_p11 }
  0x4b   : > { %p1716_p3 = pneg %p1715_p2 }
  0x4d   : > { %p1721_p1 = pnand %p1719_p4, %p1716_p3 }
  0x4f   : > { %1724 = shalt.err (!%p1721_p1)
}
  0x50   : > { %s1725_s23 = scalar_lea.vmem %s200_s9, 2048  ;;  %p1733_p12 = scmp.lt.s32.totalorder %s200_s9, %s200_s9 }
  0x51   : > { %p1726_p7 = scmp.ne.s32.totalorder %s200_s9, %s1725_s23  ;;  %p1734_p0 = scmp.lt.s32.totalorder %s1725_s23, %s1725_s23 }
  0x53   : > { %p1728_p9 = pnand %p1726_p7, %p1714_p13  ;;  %p1735_p6 = por %p1734_p0, %p1733_p12 }
  0x55   : > { %p1729_p10 = pneg %p1728_p9 }
  0x57   : > { %p1736_p8 = pnand %p1735_p6, %p1729_p10 }
  0x59   : > { %1739 = shalt.err (!%p1736_p8)
}
  0x5a   : > { %s2477_s1 = smov 4   ;;  %s2478_s7 = smov 64  }
  0x5b   : > { %1511 = dma.hbm_to_vmem [thread:$0]  (!%p2146_p5), %s2436_s3, 2048, %s200_s9, [#allocation9], %s2478_s7, %s2478_s7, %s2477_s1  }
  0x5c   : > { %p2479_p8 = scmp.ne.s32.totalorder %s2468_s15, 0  ;;  %p50_p6 = scmp.ne.s32.totalorder %s1906_s26, %s1902_s25 }
  0x5d   : > { %p56_p12 = scmp.ne.s32.totalorder %s1902_s25, %s1898_s24  ;;  %s216_s12 = sand.u32 1, %s1906_s26  }
  0x5e   : > { %s2173_s23 = scalar_select %p2479_p8, %s1906_s26, %s43_s21  }
  0x5f   : > { %s1288_s4 = sshll.u32 %s1922_s30, 5  ;;  %p2480_p0 = scmp.eq.s32.totalorder %s1926_s6, 0 }
  0x60   : > { %p2481_p13 = scmp.ne.s32.totalorder %s2471_s16, 0  ;;  %s1210_s8 = sshll.u32 %s216_s12, 6 }
  0x61   : > { %p52_p11 = por %p2480_p0, %p50_p6  ;;  %s226_s10 = sadd.s32 %s1918_s29, %s1288_s4 }
  0x62   : > { %p2185_p2 = por %p2481_p13, %p56_p12  ;;  %s1213_s11 = sshll.u32 %s226_s10, 6 }
  0x63   : > { %s220_s28 = scalar_lea.vmem [#allocation3], %s1210_s8  ;;  %s2483_s0 = sld [smem:[#allocation21_spill]] }
  0x64   : > { %s2482_s27 = scalar_select %p2185_p2, 1, 0 }
  0x65   : > { %s229_s5 = sshll.u32 %s220_s28, 4  ;;  %p2484_p5 = scmp.lt.s32.totalorder %s1926_s6, 4  ;;  %s2195_s5 = int_to_ptr.vmem [resolvable:$true] %s229_s5 }
  0x66   : > { %s2203_s4 = scalar_lea.sflag [#allocation4], %s216_s12 }
  0x67   : > { %p2199_p3 = pnand %p2484_p5, %p52_p11 }
  0x69   : > { %s2193_s21 = scalar_lea.hbm %s2483_s0, %s1213_s11  ;;  %p1742_p1 = pneg %p2199_p3 }
  0x6a   : > { %s1740_s28 = scalar_lea.hbm %s2193_s21, 1024  ;;  %s1745_s11 = scalar_lea.hbm %s2483_s0, 4096 }
  0x6b   : > { %p1741_p4 = scmp.ne.s32.totalorder %s2193_s21, %s1740_s28  ;;  %p1746_p10 = scmp.lt.u32.totalorder %s2193_s21, %s2483_s0 }
  0x6c   : > { %p1747_p8 = scmp.lt.u32.totalorder %s1745_s11, %s1740_s28  ;;  %p1749_p12 = scmp.lt.u32.totalorder %s1740_s28, %s2193_s21 }
  0x6d   : > { %p1743_p7 = pnand %p1742_p1, %p1741_p4 }
  0x6e   : > { %p1748_p6 = por %p1747_p8, %p1746_p10 }
  0x6f   : > { %p1744_p9 = pneg %p1743_p7 }
  0x70   : > { %p1750_p0 = por %p1749_p12, %p1748_p6 }
  0x72   : > { %p1751_p11 = pnand %p1750_p0, %p1744_p9 }
  0x74   : > { %1754 = shalt.err (!%p1751_p11)
}
  0x75   : > { %s1755_s12 = scalar_lea.vmem %s2195_s5, 1024  ;;  %s1932_s8 = smov [#allocation3]  }
  0x76   : > { %p1756_p5 = scmp.ne.s32.totalorder %s2195_s5, %s1755_s12  ;;  %s1760_s10 = sshll.u32 %s1932_s8, 4  ;;  %s1761_s10 = int_to_ptr.vmem [resolvable:$false] %s1760_s10 }
  0x77   : > { %s1762_s9 = scalar_lea.vmem %s1761_s10, 2048  ;;  %p1763_p2 = scmp.lt.s32.totalorder %s2195_s5, %s1761_s10 }
  0x78   : > { %p1758_p4 = pnand %p1756_p5, %p1742_p1  ;;  %p1764_p10 = scmp.lt.s32.totalorder %s1762_s9, %s1755_s12 }
  0x7a   : > { %p1759_p7 = pneg %p1758_p4  ;;  %p1765_p8 = por %p1764_p10, %p1763_p2 }
  0x7c   : > { %p1766_p6 = pnand %p1765_p8, %p1759_p7 }
  0x7e   : > { %1769 = shalt.err (!%p1766_p6)
}
  0x7f   : > { %s1933_s28 = smov 128   ;;  %s95_s11 = sadd.s32 1, %s1882_s20 }
  0x80   : > { %1515 = dma.hbm_to_vmem [thread:$0]  (!%p2199_p3), %s2193_s21, 1024, %s2195_s5, %s2203_s4, %s1933_s28, %s2478_s7, %s2477_s1  }
  0x81   : > { %p2486_p2 = scmp.eq.s32.totalorder %s2062_s13, 0  ;;  %p102_p1 = scmp.ne.s32.totalorder %s1882_s20, %s1878_s19 }
  0x82   : > { %p108_p9 = scmp.ne.s32.totalorder %s1878_s19, %s1874_s18  ;;  %s262_s15 = sand.u32 1, %s1882_s20  }
  0x83   : > { %s2237_s24 = scalar_select %p2486_p2, %s1882_s20, %s95_s11  }
  0x84   : > { %s1290_s12 = sshll.u32 %s1922_s30, 10  ;;  %p2487_p12 = scmp.eq.s32.totalorder %s1926_s6, 0 }
  0x85   : > { %p2249_p11 = por %p108_p9, %p2481_p13  ;;  %s1217_s10 = sshll.u32 %s262_s15, 6 }
  0x86   : > { %p104_p0 = por %p102_p1, %p2487_p12  ;;  %s2256_s5 = scalar_lea.hbm %s2435_s2, %s1290_s12 }
  0x87   : > { %p2489_p3 = scmp.lt.s32.totalorder %s1926_s6, 4  ;;  %s264_s13 = scalar_lea.vmem [#allocation7], %s1217_s10 }
  0x88   : > { %s271_s21 = sshll.u32 %s264_s13, 4  ;;  %s1770_s4 = scalar_lea.hbm %s2256_s5, 1024  ;;  %s2264_s21 = int_to_ptr.vmem [resolvable:$true] %s271_s21 }
  0x89   : > { %p2260_p5 = pnand %p2489_p3, %p104_p0  ;;  %p1771_p13 = scmp.ne.s32.totalorder %s2256_s5, %s1770_s4 }
  0x8a   : > { %s1775_s11 = scalar_lea.hbm %s2435_s2, 2048  ;;  %p1776_p8 = scmp.lt.u32.totalorder %s2256_s5, %s2435_s2 }
  0x8b   : > { %p1772_p4 = pneg %p2260_p5  ;;  %p1777_p6 = scmp.lt.u32.totalorder %s1775_s11, %s1770_s4 }
  0x8c   : > { %p1779_p1 = scmp.lt.u32.totalorder %s1770_s4, %s2256_s5 }
  0x8d   : > { %p1773_p7 = pnand %p1772_p4, %p1771_p13  ;;  %p1778_p2 = por %p1777_p6, %p1776_p8 }
  0x8f   : > { %p1774_p10 = pneg %p1773_p7  ;;  %p1780_p9 = por %p1779_p1, %p1778_p2 }
  0x91   : > { %p1781_p12 = pnand %p1780_p9, %p1774_p10 }
  0x93   : > { %1784 = shalt.err (!%p1781_p12)
}
  0x94   : > { %s1785_s10 = scalar_lea.vmem %s2264_s21, 1024  ;;  %s1934_s9 = smov [#allocation7]  }
  0x95   : > { %p1786_p0 = scmp.ne.s32.totalorder %s2264_s21, %s1785_s10  ;;  %s1790_s13 = sshll.u32 %s1934_s9, 4  ;;  %s1791_s13 = int_to_ptr.vmem [resolvable:$false] %s1790_s13 }
  0x96   : > { %s1792_s0 = scalar_lea.vmem %s1791_s13, 2048  ;;  %p1793_p7 = scmp.lt.s32.totalorder %s2264_s21, %s1791_s13 }
  0x97   : > { %p1788_p3 = pnand %p1786_p0, %p1772_p4  ;;  %p1794_p8 = scmp.lt.s32.totalorder %s1792_s0, %s1785_s10 }
  0x99   : > { %p1789_p13 = pneg %p1788_p3  ;;  %p1795_p6 = por %p1794_p8, %p1793_p7 }
  0x9b   : > { %p1796_p2 = pnand %p1795_p6, %p1789_p13 }
  0x9d   : > { %1799 = shalt.err (!%p1796_p2)
}
  0x9e   : > { %1521 = dma.hbm_to_vmem [thread:$0]  (!%p2260_p5), %s2256_s5, 1024, %s2264_s21, %s2089_s17, %s2478_s7, %s2478_s7, %s2477_s1  }
  0x9f   : > { %p2491_p4 = scmp.ne.s32.totalorder %s2475_s14, 0 }
  0xa0   : > { %s285_s4 = sand.u32 (!%p2491_p4), 1, %s1902_s25   ;;  %p2492_p10 = scmp.ne.s32.totalorder (!%p2491_p4), %s2482_s27, 0 }
  0xa1   : > { %283 = sbr.rel (%p2491_p4) target bundleno = 713 (0x2c9), region = 40  ;;  %s1221_s28 = sshll.u32 (!%p2491_p4), %s285_s4, 6 }
  0xa2   : > { %s286_s11 = scalar_lea.sflag (!%p2491_p4), [#allocation4], %s285_s4  ;;  %s2298_s15 = scalar_lea.vmem (!%p2491_p4), [#allocation3], %s1221_s28 }
  0xa8   : > { %1857 = dma.done.wait (%p2492_p10), %s286_s11, 1024  }
  0xa9   : > { %1859 = vsyncadd (%p2492_p10), %s286_s11, 4294966272  ;;  %s2493_s18 = sadd.s32 4294967295, %s1926_s6   ;;  %s2494_s12 = sld [smem:[#allocation20_spill]] }
  0xaa   : > { %s294_s17 = sand.u32 1, %s2493_s18   ;;  %s296_s1 = sand.u32 1, %s1890_s22  }
  0xab   : > { %s1222_s14 = sshll.u32 %s296_s1, 6  ;;  %s295_s7 = scalar_lea.sflag [#allocation6], %s294_s17 }
  0xac   : > { %s2307_s5 = scalar_lea.vmem [#allocation5], %s1222_s14 }
  0xaf   : > { %p2495_p5 = scmp.ne.s32.totalorder %s2494_s12, 0 }
  0xb1   : > { %1861 = dma.done.wait (%p2495_p5), %s295_s7, 1024  }
  0xb2   : > { %1863 = vsyncadd (%p2495_p5), %s295_s7, 4294966272  ;;  %s305_s21 = sand.u32 1, %s1878_s19  }
  0xb3   : > { %s1223_s27 = sshll.u32 %s305_s21, 6 }
  0xb4   : > { %s2314_s10 = scalar_lea.vmem [#allocation7], %s1223_s27 }
  0xb5   : > { %1865 = dma.done.wait (%p2249_p11), %s295_s7, 1024  }
  0xb6   : > { %1867 = vsyncadd (%p2249_p11), %s295_s7, 4294966272  ;;  %p2496_p1 = scmp.ne.s32.totalorder %s2471_s16, 0 }
  0xb8   : > { %1869 = dma.done.wait (%p2496_p1), [#allocation9], 2048  }
  0xb9   : > { %1871 = vsyncadd (%p2496_p1), [#allocation9], 4294965248  ;;  %s2497_s9 = sld [smem:[#allocation16_spill]]  ;;  %s2498_s11 = sld [smem:[#allocation24_spill]] }
  0xba   : > { %s2499_s12 = sld [smem:[#allocation15_spill]] }
  0xbf   : > { %s1225_s13 = sshll.u32 %s2497_s9, 4 }
  0xc0   : > { %p352_p9 = scmp.lt.s32.totalorder %s1225_s13, 31  ;;  %p1227_p12 = scmp.ne.s32.totalorder %s2499_s12, 0 }
  0xc1   : > { %v1935_v0 = vmov (!%p1227_p12), 0.0  }
  0xc2   : > { %s2528_s13 = smov (!%p352_p9, %s1225_s13), 31  ;;  %361 = sbr.rel (%p1227_p12) target bundleno = 203 (0xcb), region = 60 }
  0xc3   : > { %s1226_s0 = sshll.u32 %s2528_s13, 2  ;;  %362 = vst [vmem:[#allocation2] sm:$0xff] (!%p1227_p12), %v1935_v0  ;;  %363 = vst [vmem:[#allocation2 + $0x8] sm:$0xff] (!%p1227_p12), %v1935_v0 }
  0xc4   : > { %s2328_s18 = scalar_lea.vmem %s2498_s11, %s1226_s0  ;;  %364 = vst [vmem:[#allocation2 + $0x10] sm:$0xff] (!%p1227_p12), %v1935_v0  ;;  %365 = vst [vmem:[#allocation2 + $0x18] sm:$0xff] (!%p1227_p12), %v1935_v0 }
  0xc5   : > { %366 = vst [vmem:[#allocation2 + $0x20] sm:$0xff] (!%p1227_p12), %v1935_v0  ;;  %367 = vst [vmem:[#allocation2 + $0x28] sm:$0xff] (!%p1227_p12), %v1935_v0 }
  0xc6   : > { %368 = vst [vmem:[#allocation2 + $0x30] sm:$0xff] (!%p1227_p12), %v1935_v0  ;;  %369 = vst [vmem:[#allocation2 + $0x38] sm:$0xff] (!%p1227_p12), %v1935_v0 }
  0xc7   : > { %370 = vst [vmem:[#allocation2 + $0x40] sm:$0xff] (!%p1227_p12), %v1935_v0  ;;  %371 = vst [vmem:[#allocation2 + $0x48] sm:$0xff] (!%p1227_p12), %v1935_v0 }
  0xc8   : > { %372 = vst [vmem:[#allocation2 + $0x50] sm:$0xff] (!%p1227_p12), %v1935_v0  ;;  %373 = vst [vmem:[#allocation2 + $0x58] sm:$0xff] (!%p1227_p12), %v1935_v0 }
  0xc9   : > { %374 = vst [vmem:[#allocation2 + $0x60] sm:$0xff] %v1935_v0  ;;  %375 = vst [vmem:[#allocation2 + $0x68] sm:$0xff] %v1935_v0 }
  0xca   : > { %376 = vst [vmem:[#allocation2 + $0x70] sm:$0xff] %v1935_v0  ;;  %377 = vst [vmem:[#allocation2 + $0x78] sm:$0xff] %v1935_v0 }
  0xcb PF: > { %v1642_v1 = vld [vmem:[%s2307_s5] sm:$0xff]   ;;  %v1643_v2 = vld [vmem:[%s2307_s5 + $0x8] sm:$0xff]   ;;  %v1644_v3 = vld [vmem:[%s2307_s5 + $0x10] sm:$0xff]   ;;  %s2500_s16 = sld [smem:[#allocation15_spill]] }
  0xcc   : > { %1434 = vmatprep.subr.bf16.mxu0 %v1642_v1  ;;  %1466 = vmatprep.subr.bf16.mxu1 %v1642_v1  ;;  %v1645_v4 = vld [vmem:[%s2307_s5 + $0x18] sm:$0xff]   ;;  %v1650_v5 = vld [vmem:[%s2298_s15] sm:$0xff]   ;;  %v1647_v8 = vld [vmem:[%s2307_s5 + $0x28] sm:$0xff]  }
  0xcd   : > { %1435 = vmatpush3.bf16.msra.mxu0 %v1642_v1  ;;  %1474 = vmatpush3.bf16.msra.mxu1 %v1642_v1  ;;  %v1651_v6 = vld [vmem:[%s2298_s15 + $0x20] sm:$0xff]   ;;  %v1648_v9 = vld [vmem:[%s2307_s5 + $0x30] sm:$0xff]   ;;  %v1649_v10 = vld [vmem:[%s2307_s5 + $0x38] sm:$0xff]  }
  0xce   : > { %1436 = vmatprep.subr.bf16.mxu0 %v1643_v2  ;;  %1467 = vmatprep.subr.bf16.mxu1 %v1643_v2  ;;  %v1646_v7 = vld [vmem:[%s2307_s5 + $0x20] sm:$0xff]   ;;  %v1652_v11 = vld [vmem:[%s2298_s15 + $0x8] sm:$0xff]   ;;  %v1654_v13 = vld [vmem:[%s2298_s15 + $0x10] sm:$0xff]  }
  0xcf   : > { %1450 = vmatprep.mubr.bf16.mxu0 %v1650_v5  ;;  %1458 = vmatprep.mubr.bf16.mxu1 %v1651_v6  ;;  %v1653_v12 = vld [vmem:[%s2298_s15 + $0x28] sm:$0xff]   ;;  %v1655_v14 = vld [vmem:[%s2298_s15 + $0x30] sm:$0xff]   ;;  %v1656_v15 = vld [vmem:[%s2298_s15 + $0x18] sm:$0xff]  }
  0xd0   : > { %v1657_v16 = vld [vmem:[%s2298_s15 + $0x38] sm:$0xff]   ;;  %v380_v17 = vld [vmem:[#allocation2 + $0x10] sm:$0xff]  ;;  %v378_v19 = vld [vmem:[#allocation2] sm:$0xff] }
  0xd1   : > { %1437 = vmatpush3.bf16.msra.mxu0 %v1643_v2  ;;  %1475 = vmatpush3.bf16.msra.mxu1 %v1643_v2  ;;  %v388_v18 = vld [vmem:[#allocation2 + $0x50] sm:$0xff]  ;;  %v386_v20 = vld [vmem:[#allocation2 + $0x40] sm:$0xff]  ;;  %v381_v23 = vld [vmem:[#allocation2 + $0x18] sm:$0xff]  ;;  %p1244_p11 = scmp.ne.s32.totalorder %s2500_s16, 1 }
  0xd2   : > { %1438 = vmatprep.subr.bf16.mxu0 %v1644_v3  ;;  %1468 = vmatprep.subr.bf16.mxu1 %v1644_v3  ;;  %v389_v24 = vld [vmem:[#allocation2 + $0x58] sm:$0xff]  ;;  %v379_v29 = vld [vmem:[#allocation2 + $0x8] sm:$0xff]  ;;  %v384_v41 = vld [vmem:[#allocation2 + $0x30] sm:$0xff]  ;;  %s2501_s17 = sld [smem:[#allocation23_spill]] (!%p1244_p11) }
  0xd3   : > { %v387_v30 = vld [vmem:[#allocation2 + $0x48] sm:$0xff]  ;;  %v392_v42 = vld [vmem:[#allocation2 + $0x70] sm:$0xff]  ;;  %v382_v43 = vld [vmem:[#allocation2 + $0x20] sm:$0xff] }
  0xd4   : > { %v390_v44 = vld [vmem:[#allocation2 + $0x60] sm:$0xff]  ;;  %v385_v47 = vld [vmem:[#allocation2 + $0x38] sm:$0xff]  ;;  %v383_v53 = vld [vmem:[#allocation2 + $0x28] sm:$0xff] }
  0xd5   : > { %1439 = vmatpush3.bf16.msra.mxu0 %v1644_v3  ;;  %1476 = vmatpush3.bf16.msra.mxu1 %v1644_v3  ;;  %v393_v48 = vld [vmem:[#allocation2 + $0x78] sm:$0xff]  ;;  %v391_v54 = vld [vmem:[#allocation2 + $0x68] sm:$0xff]  ;;  %v1658_v1 = vld [vmem:[#allocation8 + $0x40] sm:$0xff] (!%p1244_p11)  }
  0xd6   : > { %1440 = vmatprep.subr.bf16.mxu0 %v1645_v4  ;;  %1469 = vmatprep.subr.bf16.mxu1 %v1645_v4  ;;  %v1659_v2 = vld [vmem:[#allocation8] sm:$0xff] (!%p1244_p11)   ;;  %v1660_v3 = vld [vmem:[#allocation8 + $0x48] sm:$0xff] (!%p1244_p11)   ;;  %v1662_v5 = vld [vmem:[#allocation8 + $0x50] sm:$0xff] (!%p1244_p11)  }
  0xd7   : > { %v1663_v6 = vld [vmem:[#allocation8 + $0x10] sm:$0xff] (!%p1244_p11)  }
  0xd9   : > { %1441 = vmatpush3.bf16.msra.mxu0 %v1645_v4  ;;  %1477 = vmatpush3.bf16.msra.mxu1 %v1645_v4  ;;  %v1661_v4 = vld [vmem:[#allocation8 + $0x8] sm:$0xff] (!%p1244_p11)  }
  0xda   : > { %1442 = vmatprep.subr.bf16.mxu0 %v1646_v7  ;;  %1470 = vmatprep.subr.bf16.mxu1 %v1646_v7 }
  0xdd   : > { %1443 = vmatpush3.bf16.msra.mxu0 %v1646_v7  ;;  %1478 = vmatpush3.bf16.msra.mxu1 %v1646_v7  ;;  %v1664_v7 = vld [vmem:[#allocation8 + $0x58] sm:$0xff] (!%p1244_p11)  }
  0xde   : > { %1444 = vmatprep.subr.bf16.mxu0 %v1647_v8  ;;  %1471 = vmatprep.subr.bf16.mxu1 %v1647_v8 }
  0xe1   : > { %1445 = vmatpush3.bf16.msra.mxu0 %v1647_v8  ;;  %1479 = vmatpush3.bf16.msra.mxu1 %v1647_v8  ;;  %v1665_v8 = vld [vmem:[#allocation8 + $0x18] sm:$0xff] (!%p1244_p11)  }
  0xe2   : > { %1446 = vmatprep.subr.bf16.mxu0 %v1648_v9  ;;  %1472 = vmatprep.subr.bf16.mxu1 %v1648_v9 }
  0xe5   : > { %1447 = vmatpush3.bf16.msra.mxu0 %v1648_v9  ;;  %1480 = vmatpush3.bf16.msra.mxu1 %v1648_v9  ;;  %v1666_v9 = vld [vmem:[#allocation8 + $0x60] sm:$0xff] (!%p1244_p11)  }
  0xe6   : > { %1448 = vmatprep.subr.bf16.mxu0 %v1649_v10  ;;  %1473 = vmatprep.subr.bf16.mxu1 %v1649_v10 }
  0xe9   : > { %1449 = vmatpush3.bf16.msra.mxu0 %v1649_v10  ;;  %1481 = vmatpush3.bf16.msra.mxu1 %v1649_v10  ;;  %v1667_v10 = vld [vmem:[#allocation8 + $0x20] sm:$0xff] (!%p1244_p11)  }
  0xea   : > { %1370 = vmatprep.subr.bf16.mxu0 (!%p1244_p11), %v1658_v1  ;;  %1482 = vmatprep.subr.bf16.mxu1 (!%p1244_p11), %v1658_v1 }
  0xec   : > { %1451 = vmatmul.mubr.bf16.vlgmr.msra.gmra.mrb[0].mxu0 %v1652_v11  ;;  %1459 = vmatmul.mubr.bf16.vlgmr.msra.gmra.mrb[0].mxu1 %v1653_v12  ;;  %v1668_v11 = vld [vmem:[#allocation8 + $0x68] sm:$0xff] (!%p1244_p11)  }
  0xed   : > { %1454 = vmatprep.mubr.bf16.mxu0 %v1654_v13  ;;  %1462 = vmatprep.mubr.bf16.mxu1 %v1655_v14 }
  0xee   : > { %1371 = vmatpush3.bf16.msra.mxu0 (!%p1244_p11), %v1659_v2  ;;  %1490 = vmatpush3.bf16.msra.mxu1 (!%p1244_p11), %v1659_v2 }
  0xef   : > { %1372 = vmatprep.subr.bf16.mxu0 (!%p1244_p11), %v1660_v3  ;;  %1483 = vmatprep.subr.bf16.mxu1 (!%p1244_p11), %v1660_v3 }
  0xf2   : > { %1373 = vmatpush3.bf16.msra.mxu0 (!%p1244_p11), %v1661_v4  ;;  %1491 = vmatpush3.bf16.msra.mxu1 (!%p1244_p11), %v1661_v4 }
  0xf3   : > { %1374 = vmatprep.subr.bf16.mxu0 (!%p1244_p11), %v1662_v5  ;;  %1484 = vmatprep.subr.bf16.mxu1 (!%p1244_p11), %v1662_v5 }
  0xf4   : > { %1455 = vmatmul.mubr.bf16.gmra.mrb[4].mxu0 %v1656_v15  ;;  %1463 = vmatmul.mubr.bf16.gmra.mrb[4].mxu1 %v1657_v16 }
  0xf6   : > { %1375 = vmatpush3.bf16.msra.mxu0 (!%p1244_p11), %v1663_v6  ;;  %1492 = vmatpush3.bf16.msra.mxu1 (!%p1244_p11), %v1663_v6 }
  0xf7   : > { %1376 = vmatprep.subr.bf16.mxu0 (!%p1244_p11), %v1664_v7  ;;  %1485 = vmatprep.subr.bf16.mxu1 (!%p1244_p11), %v1664_v7 }
  0xfa   : > { %1377 = vmatpush3.bf16.msra.mxu0 (!%p1244_p11), %v1665_v8  ;;  %1493 = vmatpush3.bf16.msra.mxu1 (!%p1244_p11), %v1665_v8 }
  0xfb   : > { %1378 = vmatprep.subr.bf16.mxu0 (!%p1244_p11), %v1666_v9  ;;  %1486 = vmatprep.subr.bf16.mxu1 (!%p1244_p11), %v1666_v9 }
  0xfe   : > { %1379 = vmatpush3.bf16.msra.mxu0 (!%p1244_p11), %v1667_v10  ;;  %1494 = vmatpush3.bf16.msra.mxu1 (!%p1244_p11), %v1667_v10 }
  0xff   : > { %1380 = vmatprep.subr.bf16.mxu0 (!%p1244_p11), %v1668_v11  ;;  %1487 = vmatprep.subr.bf16.mxu1 (!%p1244_p11), %v1668_v11 }
 0x1bf   : > { %v1452_v21 = vpop.f32.mrb[0].mxu0  ;;  %v1460_v22 = vpop.f32.mrb[0].mxu1 }
 0x1c0   : > { %v621_v25 = vadd.f32 %v1452_v21, %v380_v17  ;;  %v629_v26 = vadd.f32 %v1460_v22, %v388_v18  ;;  %v556_v27 = vpop.f32.mrb[1].mxu0  ;;  %v588_v28 = vpop.f32.mrb[1].mxu1  ;;  %v1669_v18 = vld [vmem:[#allocation8 + $0x28] sm:$0xff] (!%p1244_p11)   ;;  %v1672_v21 = vld [vmem:[#allocation8 + $0x78] sm:$0xff] (!%p1244_p11)  }
 0x1c1   : > { %v619_v31 = vadd.f32 %v556_v27, %v378_v19  ;;  %v627_v32 = vadd.f32 %v588_v28, %v386_v20  ;;  %v1453_v33 = vpop.f32.mrb[2].mxu0  ;;  %v1461_v34 = vpop.f32.mrb[2].mxu1  ;;  %v1670_v19 = vld [vmem:[#allocation8 + $0x70] sm:$0xff] (!%p1244_p11)   ;;  %1381 = vmatpush3.bf16.msra.mxu0 (!%p1244_p11), %v1669_v18  ;;  %1495 = vmatpush3.bf16.msra.mxu1 (!%p1244_p11), %v1669_v18  ;;  %v1673_v22 = vld [vmem:[#allocation8 + $0x38] sm:$0xff] (!%p1244_p11)   ;;  %v1674_v27 = vld [vmem:[%s2314_s10] sm:$0xff] (!%p1244_p11)  }
 0x1c2   : > { %637 = vst [vmem:[#allocation2 + $0x10] sm:$0xff] %v621_v25  ;;  %645 = vst [vmem:[#allocation2 + $0x50] sm:$0xff] %v629_v26  ;;  %v622_v35 = vadd.f32 %v1453_v33, %v381_v23  ;;  %v630_v36 = vadd.f32 %v1461_v34, %v389_v24  ;;  %v559_v37 = vpop.f32.mrb[3].mxu0  ;;  %v591_v38 = vpop.f32.mrb[3].mxu1  ;;  %v1671_v20 = vld [vmem:[#allocation8 + $0x30] sm:$0xff] (!%p1244_p11)   ;;  %1382 = vmatprep.subr.bf16.mxu0 (!%p1244_p11), %v1670_v19  ;;  %1488 = vmatprep.subr.bf16.mxu1 (!%p1244_p11), %v1670_v19  ;;  %v1675_v28 = vld [vmem:[%s2314_s10 + $0x20] sm:$0xff] (!%p1244_p11)  }
 0x1c3   : > { %635 = vst [vmem:[#allocation2] sm:$0xff] %v619_v31  ;;  %643 = vst [vmem:[#allocation2 + $0x40] sm:$0xff] %v627_v32  ;;  %v620_v39 = vadd.f32 %v559_v37, %v379_v29  ;;  %v628_v40 = vadd.f32 %v591_v38, %v387_v30 }
 0x1c4   : > { %638 = vst [vmem:[#allocation2 + $0x18] sm:$0xff] %v622_v35  ;;  %646 = vst [vmem:[#allocation2 + $0x58] sm:$0xff] %v630_v36  ;;  %v1676_v35 = vld [vmem:[%s2314_s10 + $0x8] sm:$0xff] (!%p1244_p11)  }
 0x1c5   : > { %636 = vst [vmem:[#allocation2 + $0x8] sm:$0xff] %v620_v39  ;;  %644 = vst [vmem:[#allocation2 + $0x48] sm:$0xff] %v628_v40  ;;  %1383 = vmatpush3.bf16.msra.mxu0 (!%p1244_p11), %v1671_v20  ;;  %1496 = vmatpush3.bf16.msra.mxu1 (!%p1244_p11), %v1671_v20  ;;  %v1677_v36 = vld [vmem:[%s2314_s10 + $0x28] sm:$0xff] (!%p1244_p11)  }
 0x1c6   : > { %1384 = vmatprep.subr.bf16.mxu0 (!%p1244_p11), %v1672_v21  ;;  %1489 = vmatprep.subr.bf16.mxu1 (!%p1244_p11), %v1672_v21 }
 0x1c7   : > { %v1456_v45 = vpop.f32.mrb[4].mxu0  ;;  %v1464_v46 = vpop.f32.mrb[4].mxu1  ;;  %654 = sbr.rel (%p1244_p11) target bundleno = 713 (0x2c9), region = 64 }
 0x1c8   : > { %v625_v49 = vadd.f32 %v1456_v45, %v384_v41  ;;  %v633_v50 = vadd.f32 %v1464_v46, %v392_v42  ;;  %v572_v51 = vpop.f32.mrb[5].mxu0  ;;  %v604_v52 = vpop.f32.mrb[5].mxu1 }
 0x1c9   : > { %v623_v55 = vadd.f32 %v572_v51, %v382_v43  ;;  %v631_v56 = vadd.f32 %v604_v52, %v390_v44  ;;  %v1457_v57 = vpop.f32.mrb[6].mxu0  ;;  %v1465_v58 = vpop.f32.mrb[6].mxu1  ;;  %v673_v23 = vld [vmem:[#allocation2 + $0x10] sm:$0xff] (!%p1244_p11)  ;;  %1385 = vmatpush3.bf16.msra.mxu0 (!%p1244_p11), %v1673_v22  ;;  %1497 = vmatpush3.bf16.msra.mxu1 (!%p1244_p11), %v1673_v22  ;;  %v2359_v51 = vld [vmem:[%s2501_s17] ss:$0 sm:$0xff] (!%p1244_p11) }
 0x1ca   : > { %641 = vst [vmem:[#allocation2 + $0x30] sm:$0xff] %v625_v49  ;;  %649 = vst [vmem:[#allocation2 + $0x70] sm:$0xff] %v633_v50  ;;  %v626_v59 = vadd.f32 %v1457_v57, %v385_v47  ;;  %v634_v60 = vadd.f32 %v1465_v58, %v393_v48  ;;  %v575_v61 = vpop.f32.mrb[7].mxu0  ;;  %v607_v62 = vpop.f32.mrb[7].mxu1  ;;  %v671_v12 = vld [vmem:[#allocation2] sm:$0xff] (!%p1244_p11)  ;;  %v681_v25 = vld [vmem:[#allocation2 + $0x50] sm:$0xff] (!%p1244_p11) }
 0x1cb   : > { %639 = vst [vmem:[#allocation2 + $0x20] sm:$0xff] %v623_v55  ;;  %647 = vst [vmem:[#allocation2 + $0x60] sm:$0xff] %v631_v56  ;;  %v624_v63 = vadd.f32 %v575_v61, %v383_v53  ;;  %v632_v0 = vadd.f32 %v607_v62, %v391_v54  ;;  %v679_v14 = vld [vmem:[#allocation2 + $0x40] sm:$0xff] (!%p1244_p11)  ;;  %v674_v24 = vld [vmem:[#allocation2 + $0x18] sm:$0xff] (!%p1244_p11) }
 0x1cc   : > { %642 = vst [vmem:[#allocation2 + $0x38] sm:$0xff] %v626_v59  ;;  %650 = vst [vmem:[#allocation2 + $0x78] sm:$0xff] %v634_v60  ;;  %v672_v13 = vld [vmem:[#allocation2 + $0x8] sm:$0xff] (!%p1244_p11)  ;;  %v682_v26 = vld [vmem:[#allocation2 + $0x58] sm:$0xff] (!%p1244_p11)  ;;  %v688_v29 = vpack.c.bf16 (!%p1244_p11), %v674_v24, %v673_v23 }
 0x1cd   : > { %640 = vst [vmem:[#allocation2 + $0x28] sm:$0xff] %v624_v63  ;;  %648 = vst [vmem:[#allocation2 + $0x68] sm:$0xff] %v632_v0  ;;  %v687_v15 = vpack.c.bf16 (!%p1244_p11), %v672_v13, %v671_v12  ;;  %v680_v16 = vld [vmem:[#allocation2 + $0x48] sm:$0xff] (!%p1244_p11)  ;;  %v692_v30 = vpack.c.bf16 (!%p1244_p11), %v682_v26, %v681_v25  ;;  %v1678_v43 = vld [vmem:[%s2314_s10 + $0x10] sm:$0xff] (!%p1244_p11)  }
 0x1ce   : > { %v691_v17 = vpack.c.bf16 %v680_v16, %v679_v14  ;;  %v1679_v44 = vld [vmem:[%s2314_s10 + $0x30] sm:$0xff]   ;;  %v1680_v47 = vld [vmem:[%s2314_s10 + $0x18] sm:$0xff]  }
 0x1cf   : > { %910 = vmatprep.mubr.bf16.mxu0 %v687_v15  ;;  %v1681_v48 = vld [vmem:[%s2314_s10 + $0x38] sm:$0xff]  }
 0x1d0   : > { %942 = vmatprep.mubr.bf16.mxu1 %v691_v17  ;;  %911 = vmatmul.mubr.bf16.vlgmr.msra.gmra.mrb[0].mxu0 %v1674_v27 }
 0x1d1   : > { %943 = vmatmul.mubr.bf16.vlgmr.msra.gmra.mrb[0].mxu1 %v1675_v28  ;;  %918 = vmatprep.mubr.bf16.mxu0 %v688_v29  ;;  %v677_v39 = vld [vmem:[#allocation2 + $0x30] sm:$0xff] }
 0x1d2   : > { %950 = vmatprep.mubr.bf16.mxu1 %v692_v30  ;;  %v675_v31 = vld [vmem:[#allocation2 + $0x20] sm:$0xff]  ;;  %v685_v41 = vld [vmem:[#allocation2 + $0x70] sm:$0xff] }
 0x1d3   : > { %v683_v33 = vld [vmem:[#allocation2 + $0x60] sm:$0xff]  ;;  %v678_v40 = vld [vmem:[#allocation2 + $0x38] sm:$0xff] }
 0x1d4   : > { %v676_v32 = vld [vmem:[#allocation2 + $0x28] sm:$0xff]  ;;  %v686_v42 = vld [vmem:[#allocation2 + $0x78] sm:$0xff]  ;;  %v690_v45 = vpack.c.bf16 %v678_v40, %v677_v39 }
 0x1d5   : > { %v684_v34 = vld [vmem:[#allocation2 + $0x68] sm:$0xff]  ;;  %v689_v37 = vpack.c.bf16 %v676_v32, %v675_v31  ;;  %v694_v46 = vpack.c.bf16 %v686_v42, %v685_v41 }
 0x1d6   : > { %v693_v38 = vpack.c.bf16 %v684_v34, %v683_v33 }
 0x1d8   : > { %919 = vmatmul.mubr.bf16.gmra.mrb[4].mxu0 %v1676_v35 }
 0x1d9   : > { %951 = vmatmul.mubr.bf16.gmra.mrb[4].mxu1 %v1677_v36  ;;  %926 = vmatprep.mubr.bf16.mxu0 %v689_v37 }
 0x1da   : > { %958 = vmatprep.mubr.bf16.mxu1 %v693_v38 }
 0x1e0   : > { %927 = vmatmul.mubr.bf16.gmra.mrb[8].mxu0 %v1678_v43 }
 0x1e1   : > { %959 = vmatmul.mubr.bf16.gmra.mrb[8].mxu1 %v1679_v44  ;;  %934 = vmatprep.mubr.bf16.mxu0 %v690_v45 }
 0x1e2   : > { %966 = vmatprep.mubr.bf16.mxu1 %v694_v46 }
 0x1e8   : > { %935 = vmatmul.mubr.bf16.gmra.mrb[12].mxu0 %v1680_v47 }
 0x1e9   : > { %967 = vmatmul.mubr.bf16.gmra.mrb[12].mxu1 %v1681_v48 }
 0x2a3   : > { %v1386_v49 = vpop.f32.mrb[0].mxu0 }
 0x2a4   : > { %v1410_v50 = vpop.f32.mrb[0].mxu1  ;;  %v1387_v52 = vpop.f32.mrb[1].mxu0 }
 0x2a5   : > { %v1411_v53 = vpop.f32.mrb[1].mxu1  ;;  %v1388_v54 = vadd.f32 %v1387_v52, %v1386_v49  ;;  %v1389_v56 = vpop.f32.mrb[2].mxu0 }
 0x2a6   : > { %v1412_v55 = vadd.f32 %v1411_v53, %v1410_v50  ;;  %v1413_v57 = vpop.f32.mrb[2].mxu1  ;;  %v1390_v58 = vpop.f32.mrb[3].mxu0 }
 0x2a7   : > { %v1414_v59 = vpop.f32.mrb[3].mxu1  ;;  %v913_v60 = vadd.f32 %v1388_v54, %v2359_v51  ;;  %v1391_v62 = vadd.f32 %v1390_v58, %v1389_v56 }
 0x2a8   : > { %v945_v61 = vadd.f32 %v1412_v55, %v2359_v51  ;;  %v1415_v63 = vadd.f32 %v1414_v59, %v1413_v57 }
 0x2a9   : > { %v916_v0 = vadd.f32 %v1391_v62, %v2359_v51  ;;  %v975_v2 = vmax.f32 %v913_v60, 0.0 }
 0x2aa   : > { %v948_v1 = vadd.f32 %v1415_v63, %v2359_v51  ;;  %v983_v3 = vmax.f32 %v945_v61, 0.0 }
 0x2ab   : > { %v976_v4 = vmax.f32 %v916_v0, 0.0  ;;  %v1392_v6 = vpop.f32.mrb[4].mxu0 }
 0x2ac   : > { %v984_v5 = vmax.f32 %v948_v1, 0.0  ;;  %v1416_v7 = vpop.f32.mrb[4].mxu1  ;;  %v1393_v8 = vpop.f32.mrb[5].mxu0 }
 0x2ad   : > { %v1417_v9 = vpop.f32.mrb[5].mxu1  ;;  %v1310_v10 = vpack.c.bf16 %v976_v4, %v975_v2  ;;  %v1394_v12 = vadd.f32 %v1393_v8, %v1392_v6  ;;  %v1395_v14 = vpop.f32.mrb[6].mxu0 }
 0x2ae   : > { %v1330_v11 = vpack.c.bf16 %v984_v5, %v983_v3  ;;  %v1418_v13 = vadd.f32 %v1417_v9, %v1416_v7  ;;  %v1419_v15 = vpop.f32.mrb[6].mxu1  ;;  %v1396_v16 = vpop.f32.mrb[7].mxu0 }
 0x2af   : > { %v1420_v17 = vpop.f32.mrb[7].mxu1  ;;  %1311 = vst [vmem:[%s2328_s18] sm:$0xff] %v1310_v10   ;;  %v921_v18 = vadd.f32 %v1394_v12, %v2359_v51  ;;  %v1397_v20 = vadd.f32 %v1396_v16, %v1395_v14 }
 0x2b0   : > { %1350 = vst [vmem:[%s2328_s18 + $0x20] sm:$0xff] %v1330_v11   ;;  %v953_v19 = vadd.f32 %v1418_v13, %v2359_v51  ;;  %v1421_v21 = vadd.f32 %v1420_v17, %v1419_v15 }
 0x2b1   : > { %v924_v22 = vadd.f32 %v1397_v20, %v2359_v51  ;;  %v977_v24 = vmax.f32 %v921_v18, 0.0 }
 0x2b2   : > { %v956_v23 = vadd.f32 %v1421_v21, %v2359_v51  ;;  %v985_v25 = vmax.f32 %v953_v19, 0.0 }
 0x2b3   : > { %v978_v26 = vmax.f32 %v924_v22, 0.0  ;;  %v1398_v28 = vpop.f32.mrb[8].mxu0 }
 0x2b4   : > { %v986_v27 = vmax.f32 %v956_v23, 0.0  ;;  %v1422_v29 = vpop.f32.mrb[8].mxu1  ;;  %v1399_v30 = vpop.f32.mrb[9].mxu0 }
 0x2b5   : > { %v1423_v31 = vpop.f32.mrb[9].mxu1  ;;  %v1315_v32 = vpack.c.bf16 %v978_v26, %v977_v24  ;;  %v1400_v34 = vadd.f32 %v1399_v30, %v1398_v28  ;;  %v1401_v36 = vpop.f32.mrb[10].mxu0 }
 0x2b6   : > { %v1335_v33 = vpack.c.bf16 %v986_v27, %v985_v25  ;;  %v1424_v35 = vadd.f32 %v1423_v31, %v1422_v29  ;;  %v1425_v37 = vpop.f32.mrb[10].mxu1  ;;  %v1402_v38 = vpop.f32.mrb[11].mxu0 }
 0x2b7   : > { %v1426_v39 = vpop.f32.mrb[11].mxu1  ;;  %1347 = vst [vmem:[%s2328_s18 + $0x8] sm:$0xff] %v1315_v32   ;;  %v929_v40 = vadd.f32 %v1400_v34, %v2359_v51  ;;  %v1403_v42 = vadd.f32 %v1402_v38, %v1401_v36 }
 0x2b8   : > { %1351 = vst [vmem:[%s2328_s18 + $0x28] sm:$0xff] %v1335_v33   ;;  %v961_v41 = vadd.f32 %v1424_v35, %v2359_v51  ;;  %v1427_v43 = vadd.f32 %v1426_v39, %v1425_v37 }
 0x2b9   : > { %v932_v44 = vadd.f32 %v1403_v42, %v2359_v51  ;;  %v979_v46 = vmax.f32 %v929_v40, 0.0 }
 0x2ba   : > { %v964_v45 = vadd.f32 %v1427_v43, %v2359_v51  ;;  %v987_v47 = vmax.f32 %v961_v41, 0.0 }
 0x2bb   : > { %v980_v48 = vmax.f32 %v932_v44, 0.0  ;;  %v1404_v50 = vpop.f32.mrb[12].mxu0 }
 0x2bc   : > { %v988_v49 = vmax.f32 %v964_v45, 0.0  ;;  %v1428_v52 = vpop.f32.mrb[12].mxu1  ;;  %v1405_v53 = vpop.f32.mrb[13].mxu0 }
 0x2bd   : > { %v1429_v54 = vpop.f32.mrb[13].mxu1  ;;  %v1320_v55 = vpack.c.bf16 %v980_v48, %v979_v46  ;;  %v1406_v57 = vadd.f32 %v1405_v53, %v1404_v50  ;;  %v1407_v59 = vpop.f32.mrb[14].mxu0 }
 0x2be   : > { %v1340_v56 = vpack.c.bf16 %v988_v49, %v987_v47  ;;  %v1430_v58 = vadd.f32 %v1429_v54, %v1428_v52  ;;  %v1431_v60 = vpop.f32.mrb[14].mxu1  ;;  %v1408_v61 = vpop.f32.mrb[15].mxu0 }
 0x2bf   : > { %v1432_v62 = vpop.f32.mrb[15].mxu1  ;;  %1348 = vst [vmem:[%s2328_s18 + $0x10] sm:$0xff] %v1320_v55   ;;  %v937_v63 = vadd.f32 %v1406_v57, %v2359_v51  ;;  %v1409_v1 = vadd.f32 %v1408_v61, %v1407_v59 }
 0x2c0   : > { %1352 = vst [vmem:[%s2328_s18 + $0x30] sm:$0xff] %v1340_v56   ;;  %v969_v0 = vadd.f32 %v1430_v58, %v2359_v51  ;;  %v1433_v2 = vadd.f32 %v1432_v62, %v1431_v60 }
 0x2c1   : > { %v940_v3 = vadd.f32 %v1409_v1, %v2359_v51  ;;  %v981_v5 = vmax.f32 %v937_v63, 0.0 }
 0x2c2   : > { %v972_v4 = vadd.f32 %v1433_v2, %v2359_v51  ;;  %v989_v6 = vmax.f32 %v969_v0, 0.0 }
 0x2c3   : > { %v982_v7 = vmax.f32 %v940_v3, 0.0 }
 0x2c4   : > { %v990_v8 = vmax.f32 %v972_v4, 0.0 }
 0x2c5   : > { %v1325_v9 = vpack.c.bf16 %v982_v7, %v981_v5 }
 0x2c6   : > { %v1345_v10 = vpack.c.bf16 %v990_v8, %v989_v6 }
 0x2c7   : > { %1349 = vst [vmem:[%s2328_s18 + $0x18] sm:$0xff] %v1325_v9  }
 0x2c8   : > { %1353 = vst [vmem:[%s2328_s18 + $0x38] sm:$0xff] %v1345_v10  }
 0x2c9 PF: > { %s22_s6 = sadd.s32 1, %s1926_s6   ;;  %s2503_s14 = sld [smem:[#allocation14_spill]] }
 0x2ca   : > { %p2386_p0 = scmp.ge.s32.totalorder %s22_s6, 6   ;;  %s2504_s7 = sld [smem:[#allocation19_spill]] }
 0x2cb   : > { %s2505_s5 = smov %s2173_s23  ;;  %s2506_s10 = sld [smem:[#allocation17_spill]] }
 0x2cc   : > { %s2507_s9 = sld [smem:[#allocation18_spill]]  ;;  %s2508_s18 = smov %s1878_s19 }
 0x2cd   : > { %s2509_s19 = smov %s1882_s20  ;;  %s2510_s20 = smov %s2237_s24 }
 0x2ce   : > { %s2511_s21 = smov %s1890_s22  ;;  %s2514_s24 = smov %s1902_s25 }
 0x2cf   : > { %s2512_s22 = smov %s2503_s14  ;;  %s2515_s25 = smov %s1906_s26 }
 0x2d0   : > { %s2513_s23 = smov %s2504_s7  ;;  %s2516_s26 = smov %s2505_s5 }
 0x2d1   : > { %s2517_s27 = smov %s1918_s29  ;;  %s2518_s28 = smov %s1922_s30 }
 0x2d2   : > { %s2519_s29 = smov %s2506_s10  ;;  %s2520_s30 = smov %s2507_s9 }
 0x2d3   :  { %21 = sbr.rel (!%p2386_p0) target bundleno = 16 (0x10), region = 116 }
 0x2da   :  { %1093 = vsyncpa [#allocation4], 1 }
 0x2db   :  { %1095 = vsyncpa [#allocation4 + $0x1], 1 }
 0x2dc   :  { %1096 = vsyncpa [#allocation6], 1 }
 0x2dd   :  { %1098 = vsyncpa [#allocation6 + $0x1], 1 }
 0x2de   :  { %1099 = vsyncpa [#allocation9], 1 }

// kernel: graphsage_forward.3
= control target key start
LH: loop header
LB: loop body
LE: loop exit
PB: predicated region body
PF: predicated region fallthrough
CT: control target
= control target key end

     0   :  { %s2260_s0 = inlined_call_operand.vmem [shape: bf16[256,256], index: 0, kind: input, shape index: {}]   ;;  %s2261_s1 = inlined_call_operand.vmem [shape: bf16[256,128], index: 1, kind: input, shape index: {}, may-alias: {1,2}]   ;;  %s2262_s2 = inlined_call_operand.vmem [shape: bf16[256,128], index: 2, kind: input, shape index: {}, may-alias: {1,2}]   ;;  %s2263_s3 = inlined_call_operand.vmem [shape: bf16[256,128], index: 3, kind: input, shape index: {}]   ;;  %s2264_s4 = inlined_call_operand.vmem [shape: f32[1,128], index: 4, kind: input, shape index: {}]   ;;  %s2265_s5 = inlined_call_operand.vmem [shape: bf16[128,128], index: 5, kind: input, shape index: {}]   ;;  %s2266_s6 = inlined_call_operand.vmem [shape: f32[1,128], index: 6, kind: input, shape index: {}]   ;;  %s2267_s7 = inlined_call_operand.hbm [shape: f32[256,128], index: 7, kind: output, shape index: {}]  }
   0x1   :  { %2274 = sst [smem:[#allocation12_spill]] %s2260_s0 }
   0x2   :  { %12 = vsyncpa [#allocation5], 0 }
   0x3   :  { %14 = vsyncpa [#allocation5 + $0x1], 0  ;;  %s1914_s24 = smov 0   ;;  %s1916_s25 = smov 0  }
   0x4   :  { %s1918_s26 = smov 0   ;;  %s1920_s27 = smov 0  }
   0x5   :  { %s1922_s28 = smov 0   ;;  %s1924_s29 = smov 0  }
   0x6   :  { %s1926_s30 = smov 0   ;;  %s1928_s8 = smov 0  }
   0x7   :  { %s1930_s9 = smov 0   ;;  %s1932_s10 = smov 0  }
   0x8 LB: > { %2275 = sst [smem:[#allocation7_spill]] %s1860_s8  ;;  %s1370_s11 = sadd.s32 4294967295, %s1868_s10   ;;  %s1868_s10 = sphi %s1932_s10, %s20_s10   ;;  %s1864_s9 = sphi %s1930_s9, %s2289_s9   ;;  %s1860_s8 = sphi %s1928_s8, %s2288_s8   ;;  %s1856_s30 = sphi %s1926_s30, %s2287_s30   ;;  %s1852_s29 = sphi %s1924_s29, %s2286_s29   ;;  %s1848_s28 = sphi %s1922_s28, %s2294_s28   ;;  %s1844_s27 = sphi %s1920_s27, %s2293_s27   ;;  %s1840_s26 = sphi %s1918_s26, %s2292_s26   ;;  %s1836_s25 = sphi %s1916_s25, %s2291_s25   ;;  %s1832_s24 = sphi %s1914_s24, %s2290_s24  }
   0x9   : > { %2276 = sst [smem:[#allocation8_spill]] %s1864_s9  ;;  %s1371_s12 = sadd.s32 4294967294, %s1868_s10  }
   0xa   : > { %s29_s13 = sadd.s32 1, %s1860_s8  ;;  %s32_s14 = sadd.s32 1, %s1864_s9 }
   0xb   : > { %p30_p0 = scmp.ge.s32.totalorder %s29_s13, 2  ;;  %s41_s15 = sadd.s32 1, %s1848_s28 }
   0xc   : > { %p48_p1 = scmp.ne.s32.totalorder %s1848_s28, %s1844_s27  ;;  %p49_p2 = scmp.eq.s32.totalorder %s1868_s10, 0 }
   0xd   : > { %s2296_s13 = smov (%p30_p0, %s29_s13), 0  ;;  %s2298_s14 = smov (!%p30_p0, %s32_s14), %s1864_s9 }
   0xe   : > { %2277 = sst [smem:[#allocation9_spill]] %s2296_s13  ;;  %s37_s16 = ssub.s32 %s1860_s8, %s2296_s13 }
   0xf   : > { %p1977_p3 = por %p49_p2, %p48_p1  ;;  %p34_p4 = scmp.ge.s32.totalorder %s2298_s14, 2 }
  0x10   : > { %s203_s18 = sadd.s32 1, %s1840_s26  ;;  %p213_p5 = scmp.ne.s32.totalorder %s1840_s26, %s1836_s25 }
  0x11   : > { %p214_p6 = scmp.eq.s32.totalorder %s1370_s11, 3  ;;  %s2300_s14 = smov (%p34_p4, %s2298_s14), 0 }
  0x12   : > { %2279 = sst [smem:[#allocation10_spill]] %s2300_s14  ;;  %p219_p8 = scmp.ne.s32.totalorder %s1836_s25, %s1832_s24 }
  0x13   : > { %p1986_p7 = por %p214_p6, %p213_p5  ;;  %s36_s20 = ssub.s32 %s1864_s9, %s2300_s14 }
  0x14   : > { %p220_p9 = scmp.eq.s32.totalorder %s1371_s12, 3  ;;  %s38_s21 = sor.u32 %s37_s16, %s36_s20 }
  0x15   : > { %p201_p10 = scmp.eq.s32.totalorder %s36_s20, 0  ;;  %p39_p11 = scmp.eq.s32.totalorder %s38_s21, 0 }
  0x16   : > { %p1994_p12 = por %p220_p9, %p219_p8  ;;  %p1373_p13 = scmp.ge.s32.totalorder %s1868_s10, 4 }
  0x17   : > { %s1999_s23 = scalar_select %p201_p10, %s1840_s26, %s203_s18  }
  0x18   : > { %s2281_s22 = scalar_select %p1994_p12, 1, 0 }
  0x19   : > { %s2002_s11 = scalar_select %p39_p11, %s1848_s28, %s41_s15  }
  0x1a   : > { %2282 = sst [smem:[#allocation11_spill]] %s2281_s22  ;;  %248 = sbr.rel (%p1373_p13) target bundleno = 53 (0x35), region = 32 }
  0x21   : > { %251 = sbr.rel (!%p1977_p3) target bundleno = 53 (0x35), region = 36  ;;  %s253_s12 = sand.u32 (%p1977_p3), 1, %s1848_s28  }
  0x22   : > { %s1442_s16 = sshll.u32 (%p1977_p3), %s1864_s9, 5  ;;  %s1374_s20 = sshll.u32 (%p1977_p3), %s253_s12, 6 }
  0x23   : > { %s258_s21 = sadd.s32 (%p1977_p3), %s1860_s8, %s1442_s16  ;;  %s2283_s0 = sld [smem:[#allocation12_spill]] (%p1977_p3) }
  0x24   : > { %s1377_s14 = sshll.u32 (%p1977_p3), %s258_s21, 2  ;;  %s255_s15 = scalar_lea.vmem (%p1977_p3), [#allocation3], %s1374_s20 }
  0x29   : > { %s2013_s18 = scalar_lea.vmem %s2283_s0, %s1377_s14 }
  0x2a   : > { %v276_v0 = vld [vmem:[%s2013_s18] sm:$0xf]  ;;  %v278_v1 = vld [vmem:[%s2013_s18 + $0x8] sm:$0xf]  ;;  %v280_v2 = vld [vmem:[%s2013_s18 + $0x10] sm:$0xf] }
  0x2b   : > { %277 = vst [vmem:[%s255_s15] sm:$0xf] %v276_v0  ;;  %279 = vst [vmem:[%s255_s15 + $0x4] sm:$0xf] %v278_v1  ;;  %v282_v3 = vld [vmem:[%s2013_s18 + $0x18] sm:$0xf] }
  0x2c   : > { %281 = vst [vmem:[%s255_s15 + $0x8] sm:$0xf] %v280_v2  ;;  %v284_v4 = vld [vmem:[%s2013_s18 + $0x20] sm:$0xf]  ;;  %v286_v5 = vld [vmem:[%s2013_s18 + $0x28] sm:$0xf] }
  0x2d   : > { %283 = vst [vmem:[%s255_s15 + $0xc] sm:$0xf] %v282_v3  ;;  %285 = vst [vmem:[%s255_s15 + $0x10] sm:$0xf] %v284_v4  ;;  %v288_v6 = vld [vmem:[%s2013_s18 + $0x30] sm:$0xf] }
  0x2e   : > { %287 = vst [vmem:[%s255_s15 + $0x14] sm:$0xf] %v286_v5  ;;  %v290_v7 = vld [vmem:[%s2013_s18 + $0x38] sm:$0xf]  ;;  %v292_v8 = vld [vmem:[%s2013_s18 + $0x40] sm:$0xf] }
  0x2f   : > { %289 = vst [vmem:[%s255_s15 + $0x18] sm:$0xf] %v288_v6  ;;  %291 = vst [vmem:[%s255_s15 + $0x1c] sm:$0xf] %v290_v7  ;;  %v294_v9 = vld [vmem:[%s2013_s18 + $0x48] sm:$0xf] }
  0x30   : > { %293 = vst [vmem:[%s255_s15 + $0x20] sm:$0xf] %v292_v8  ;;  %v296_v10 = vld [vmem:[%s2013_s18 + $0x50] sm:$0xf]  ;;  %v298_v11 = vld [vmem:[%s2013_s18 + $0x58] sm:$0xf] }
  0x31   : > { %295 = vst [vmem:[%s255_s15 + $0x24] sm:$0xf] %v294_v9  ;;  %297 = vst [vmem:[%s255_s15 + $0x28] sm:$0xf] %v296_v10  ;;  %v300_v12 = vld [vmem:[%s2013_s18 + $0x60] sm:$0xf] }
  0x32   : > { %299 = vst [vmem:[%s255_s15 + $0x2c] sm:$0xf] %v298_v11  ;;  %v302_v13 = vld [vmem:[%s2013_s18 + $0x68] sm:$0xf]  ;;  %v304_v14 = vld [vmem:[%s2013_s18 + $0x70] sm:$0xf] }
  0x33   : > { %301 = vst [vmem:[%s255_s15 + $0x30] sm:$0xf] %v300_v12  ;;  %303 = vst [vmem:[%s255_s15 + $0x34] sm:$0xf] %v302_v13  ;;  %v306_v15 = vld [vmem:[%s2013_s18 + $0x78] sm:$0xf] }
  0x34   : > { %305 = vst [vmem:[%s255_s15 + $0x38] sm:$0xf] %v304_v14  ;;  %307 = vst [vmem:[%s255_s15 + $0x3c] sm:$0xf] %v306_v15 }
  0x35 PF: > { %p1378_p0 = scmp.ge.s32.totalorder %s1868_s10, 1  ;;  %p379_p1 = scmp.lt.s32.totalorder %s1868_s10, 5 }
  0x37   : > { %p380_p2 = pnand %p1378_p0, %p379_p1 }
  0x38   : > { %s386_s13 = sand.u32 (!%p380_p2), 1, %s1844_s27   ;;  %s2273_s14 = sand.u32 (!%p380_p2), 1, %s1836_s25  }
  0x39   : > { %383 = sbr.rel (%p380_p2) target bundleno = 856 (0x358), region = 85  ;;  %s1379_s17 = sshll.u32 (!%p380_p2), %s386_s13, 6 }
  0x3a   : > { %s1380_s22 = sshll.u32 (!%p380_p2), %s2273_s14, 7  ;;  %s1381_s12 = sshll.u32 (!%p380_p2), %s1852_s29, 4 }
  0x3b   : > { %s1383_s16 = sshll.u32 (!%p380_p2), %s1856_s30, 4  ;;  %p429_p3 = scmp.lt.s32.totalorder (!%p380_p2), %s1381_s12, 31 }
  0x3c   : > { %p435_p4 = scmp.lt.s32.totalorder (!%p380_p2), %s1383_s16, 31  ;;  %s2049_s13 = scalar_lea.vmem (!%p380_p2), [#allocation3], %s1379_s17 }
  0x3d   : > { %s2051_s14 = scalar_lea.vmem (!%p380_p2), [#allocation4], %s1380_s22  ;;  %p1385_p5 = scmp.ne.s32.totalorder (!%p380_p2), %s1852_s29, 0 }
  0x40   : > { %s2302_s12 = smov (!%p429_p3, %s1381_s12), 31  ;;  %s2304_s16 = smov (!%p435_p4, %s1383_s16), 31 }
  0x41   : > { %s1382_s20 = sshll.u32 %s2302_s12, 2  ;;  %s1384_s0 = sshll.u32 %s2304_s16, 2  ;;  %v1870_v16 = vmov (!%p1385_p5), 0.0  }
  0x42   : > { %s2042_s15 = scalar_lea.vmem %s2261_s1, %s1382_s20  ;;  %s2047_s27 = scalar_lea.vmem %s2262_s2, %s1384_s0  ;;  %446 = vst [vmem:[#allocation2] sm:$0xff] (!%p1385_p5), %v1870_v16  ;;  %447 = vst [vmem:[#allocation2 + $0x8] sm:$0xff] (!%p1385_p5), %v1870_v16 }
  0x43   : > { %445 = sbr.rel (%p1385_p5) target bundleno = 74 (0x4a), region = 93  ;;  %448 = vst [vmem:[#allocation2 + $0x10] sm:$0xff] (!%p1385_p5), %v1870_v16  ;;  %449 = vst [vmem:[#allocation2 + $0x18] sm:$0xff] (!%p1385_p5), %v1870_v16 }
  0x44   : > { %450 = vst [vmem:[#allocation2 + $0x20] sm:$0xff] (!%p1385_p5), %v1870_v16  ;;  %451 = vst [vmem:[#allocation2 + $0x28] sm:$0xff] (!%p1385_p5), %v1870_v16 }
  0x45   : > { %452 = vst [vmem:[#allocation2 + $0x30] sm:$0xff] (!%p1385_p5), %v1870_v16  ;;  %453 = vst [vmem:[#allocation2 + $0x38] sm:$0xff] (!%p1385_p5), %v1870_v16 }
  0x46   : > { %454 = vst [vmem:[#allocation2 + $0x40] sm:$0xff] (!%p1385_p5), %v1870_v16  ;;  %455 = vst [vmem:[#allocation2 + $0x48] sm:$0xff] (!%p1385_p5), %v1870_v16 }
  0x47   : > { %456 = vst [vmem:[#allocation2 + $0x50] sm:$0xff] (!%p1385_p5), %v1870_v16  ;;  %457 = vst [vmem:[#allocation2 + $0x58] sm:$0xff] (!%p1385_p5), %v1870_v16 }
  0x48   : > { %458 = vst [vmem:[#allocation2 + $0x60] sm:$0xff] (!%p1385_p5), %v1870_v16  ;;  %459 = vst [vmem:[#allocation2 + $0x68] sm:$0xff] (!%p1385_p5), %v1870_v16 }
  0x49   : > { %460 = vst [vmem:[#allocation2 + $0x70] sm:$0xff] (!%p1385_p5), %v1870_v16  ;;  %461 = vst [vmem:[#allocation2 + $0x78] sm:$0xff] (!%p1385_p5), %v1870_v16 }
  0x4a PF: > { %v1710_v17 = vld [vmem:[%s2042_s15] sm:$0xff]   ;;  %v1711_v18 = vld [vmem:[%s2042_s15 + $0x8] sm:$0xff]   ;;  %v1712_v19 = vld [vmem:[%s2042_s15 + $0x10] sm:$0xff]   ;;  %p1402_p6 = scmp.ne.s32.totalorder %s1852_s29, 1 }
  0x4b   : > { %1540 = vmatprep.subr.bf16.mxu0 %v1710_v17  ;;  %1604 = vmatprep.subr.bf16.mxu1 %v1710_v17  ;;  %v1713_v20 = vld [vmem:[%s2042_s15 + $0x18] sm:$0xff]   ;;  %v1718_v21 = vld [vmem:[%s2049_s13] sm:$0xff]   ;;  %v1715_v24 = vld [vmem:[%s2042_s15 + $0x28] sm:$0xff]  }
  0x4c   : > { %1541 = vmatpush3.bf16.msra.mxu0 %v1710_v17  ;;  %1612 = vmatpush3.bf16.msra.mxu1 %v1710_v17  ;;  %v1719_v22 = vld [vmem:[%s2049_s13 + $0x20] sm:$0xff]   ;;  %v1716_v25 = vld [vmem:[%s2042_s15 + $0x30] sm:$0xff]   ;;  %v1717_v26 = vld [vmem:[%s2042_s15 + $0x38] sm:$0xff]  }
  0x4d   : > { %1542 = vmatprep.subr.bf16.mxu0 %v1711_v18  ;;  %1605 = vmatprep.subr.bf16.mxu1 %v1711_v18  ;;  %v1714_v23 = vld [vmem:[%s2042_s15 + $0x20] sm:$0xff]   ;;  %v1720_v27 = vld [vmem:[%s2049_s13 + $0x8] sm:$0xff]   ;;  %v1722_v29 = vld [vmem:[%s2049_s13 + $0x10] sm:$0xff]  }
  0x4e   : > { %1556 = vmatprep.mubr.bf16.mxu0 %v1718_v21  ;;  %1564 = vmatprep.mubr.bf16.mxu1 %v1719_v22  ;;  %v1721_v28 = vld [vmem:[%s2049_s13 + $0x28] sm:$0xff]   ;;  %v1723_v30 = vld [vmem:[%s2049_s13 + $0x30] sm:$0xff]   ;;  %v1724_v31 = vld [vmem:[%s2049_s13 + $0x18] sm:$0xff]  }
  0x4f   : > { %v1725_v32 = vld [vmem:[%s2049_s13 + $0x38] sm:$0xff]   ;;  %v464_v33 = vld [vmem:[#allocation2 + $0x10] sm:$0xff]  ;;  %v462_v35 = vld [vmem:[#allocation2] sm:$0xff] }
  0x50   : > { %1543 = vmatpush3.bf16.msra.mxu0 %v1711_v18  ;;  %1613 = vmatpush3.bf16.msra.mxu1 %v1711_v18  ;;  %v472_v34 = vld [vmem:[#allocation2 + $0x50] sm:$0xff]  ;;  %v470_v36 = vld [vmem:[#allocation2 + $0x40] sm:$0xff]  ;;  %v465_v39 = vld [vmem:[#allocation2 + $0x18] sm:$0xff] }
  0x51   : > { %1544 = vmatprep.subr.bf16.mxu0 %v1712_v19  ;;  %1606 = vmatprep.subr.bf16.mxu1 %v1712_v19  ;;  %v473_v40 = vld [vmem:[#allocation2 + $0x58] sm:$0xff]  ;;  %v463_v45 = vld [vmem:[#allocation2 + $0x8] sm:$0xff]  ;;  %v468_v57 = vld [vmem:[#allocation2 + $0x30] sm:$0xff] }
  0x52   : > { %v471_v46 = vld [vmem:[#allocation2 + $0x48] sm:$0xff]  ;;  %v476_v58 = vld [vmem:[#allocation2 + $0x70] sm:$0xff]  ;;  %v466_v59 = vld [vmem:[#allocation2 + $0x20] sm:$0xff] }
  0x53   : > { %v474_v60 = vld [vmem:[#allocation2 + $0x60] sm:$0xff]  ;;  %v469_v63 = vld [vmem:[#allocation2 + $0x38] sm:$0xff]  ;;  %v467_v5 = vld [vmem:[#allocation2 + $0x28] sm:$0xff] }
  0x54   : > { %1545 = vmatpush3.bf16.msra.mxu0 %v1712_v19  ;;  %1614 = vmatpush3.bf16.msra.mxu1 %v1712_v19  ;;  %v477_v0 = vld [vmem:[#allocation2 + $0x78] sm:$0xff]  ;;  %v475_v6 = vld [vmem:[#allocation2 + $0x68] sm:$0xff]  ;;  %v1726_v17 = vld [vmem:[%s2263_s3 + $0x40] sm:$0xff] (!%p1402_p6)  }
  0x55   : > { %1546 = vmatprep.subr.bf16.mxu0 %v1713_v20  ;;  %1607 = vmatprep.subr.bf16.mxu1 %v1713_v20  ;;  %v1727_v18 = vld [vmem:[%s2263_s3] sm:$0xff] (!%p1402_p6)   ;;  %v1728_v19 = vld [vmem:[%s2263_s3 + $0x48] sm:$0xff] (!%p1402_p6)   ;;  %v1730_v21 = vld [vmem:[%s2263_s3 + $0x50] sm:$0xff] (!%p1402_p6)  }
  0x56   : > { %v1731_v22 = vld [vmem:[%s2263_s3 + $0x10] sm:$0xff] (!%p1402_p6)  }
  0x58   : > { %1547 = vmatpush3.bf16.msra.mxu0 %v1713_v20  ;;  %1615 = vmatpush3.bf16.msra.mxu1 %v1713_v20  ;;  %v1729_v20 = vld [vmem:[%s2263_s3 + $0x8] sm:$0xff] (!%p1402_p6)  }
  0x59   : > { %1548 = vmatprep.subr.bf16.mxu0 %v1714_v23  ;;  %1608 = vmatprep.subr.bf16.mxu1 %v1714_v23 }
  0x5c   : > { %1549 = vmatpush3.bf16.msra.mxu0 %v1714_v23  ;;  %1616 = vmatpush3.bf16.msra.mxu1 %v1714_v23  ;;  %v1732_v23 = vld [vmem:[%s2263_s3 + $0x58] sm:$0xff] (!%p1402_p6)  }
  0x5d   : > { %1550 = vmatprep.subr.bf16.mxu0 %v1715_v24  ;;  %1609 = vmatprep.subr.bf16.mxu1 %v1715_v24 }
  0x60   : > { %1551 = vmatpush3.bf16.msra.mxu0 %v1715_v24  ;;  %1617 = vmatpush3.bf16.msra.mxu1 %v1715_v24  ;;  %v1733_v24 = vld [vmem:[%s2263_s3 + $0x18] sm:$0xff] (!%p1402_p6)  }
  0x61   : > { %1552 = vmatprep.subr.bf16.mxu0 %v1716_v25  ;;  %1610 = vmatprep.subr.bf16.mxu1 %v1716_v25 }
  0x64   : > { %1553 = vmatpush3.bf16.msra.mxu0 %v1716_v25  ;;  %1618 = vmatpush3.bf16.msra.mxu1 %v1716_v25  ;;  %v1734_v25 = vld [vmem:[%s2263_s3 + $0x60] sm:$0xff] (!%p1402_p6)  }
  0x65   : > { %1554 = vmatprep.subr.bf16.mxu0 %v1717_v26  ;;  %1611 = vmatprep.subr.bf16.mxu1 %v1717_v26 }
  0x68   : > { %1555 = vmatpush3.bf16.msra.mxu0 %v1717_v26  ;;  %1619 = vmatpush3.bf16.msra.mxu1 %v1717_v26  ;;  %v1735_v26 = vld [vmem:[%s2263_s3 + $0x20] sm:$0xff] (!%p1402_p6)  }
  0x69   : > { %1460 = vmatprep.subr.bf16.mxu0 (!%p1402_p6), %v1726_v17 }
  0x6b   : > { %1557 = vmatmul.mubr.bf16.vlgmr.msra.gmra.mrb[0].mxu0 %v1720_v27  ;;  %1565 = vmatmul.mubr.bf16.vlgmr.msra.gmra.mrb[0].mxu1 %v1721_v28  ;;  %v1736_v27 = vld [vmem:[%s2263_s3 + $0x68] sm:$0xff] (!%p1402_p6)  }
  0x6c   : > { %1560 = vmatprep.mubr.bf16.mxu0 %v1722_v29  ;;  %1568 = vmatprep.mubr.bf16.mxu1 %v1723_v30 }
  0x6d   : > { %1461 = vmatpush3.bf16.msra.mxu0 (!%p1402_p6), %v1727_v18 }
  0x6e   : > { %1462 = vmatprep.subr.bf16.mxu0 (!%p1402_p6), %v1728_v19 }
  0x71   : > { %1463 = vmatpush3.bf16.msra.mxu0 (!%p1402_p6), %v1729_v20 }
  0x72   : > { %1464 = vmatprep.subr.bf16.mxu0 (!%p1402_p6), %v1730_v21 }
  0x73   : > { %1561 = vmatmul.mubr.bf16.gmra.mrb[4].mxu0 %v1724_v31  ;;  %1569 = vmatmul.mubr.bf16.gmra.mrb[4].mxu1 %v1725_v32  ;;  %v1737_v31 = vld [vmem:[%s2263_s3 + $0x28] sm:$0xff] (!%p1402_p6)   ;;  %v1738_v32 = vld [vmem:[%s2263_s3 + $0x70] sm:$0xff] (!%p1402_p6)  }
  0x75   : > { %1465 = vmatpush3.bf16.msra.mxu0 (!%p1402_p6), %v1731_v22 }
  0x76   : > { %1466 = vmatprep.subr.bf16.mxu0 (!%p1402_p6), %v1732_v23 }
  0x79   : > { %1467 = vmatpush3.bf16.msra.mxu0 (!%p1402_p6), %v1733_v24 }
  0x7a   : > { %1468 = vmatprep.subr.bf16.mxu0 (!%p1402_p6), %v1734_v25 }
  0x7d   : > { %1469 = vmatpush3.bf16.msra.mxu0 (!%p1402_p6), %v1735_v26 }
  0x7e   : > { %1470 = vmatprep.subr.bf16.mxu0 (!%p1402_p6), %v1736_v27 }
  0x81   : > { %1471 = vmatpush3.bf16.msra.mxu0 (!%p1402_p6), %v1737_v31 }
  0x82   : > { %1472 = vmatprep.subr.bf16.mxu0 (!%p1402_p6), %v1738_v32 }
 0x13e   : > { %v1558_v37 = vpop.f32.mrb[0].mxu0  ;;  %v1566_v38 = vpop.f32.mrb[0].mxu1 }
 0x13f   : > { %v705_v41 = vadd.f32 %v1558_v37, %v464_v33  ;;  %v713_v42 = vadd.f32 %v1566_v38, %v472_v34  ;;  %v640_v43 = vpop.f32.mrb[1].mxu0  ;;  %v672_v44 = vpop.f32.mrb[1].mxu1  ;;  %v1739_v33 = vld [vmem:[%s2263_s3 + $0x30] sm:$0xff] (!%p1402_p6)   ;;  %v1740_v34 = vld [vmem:[%s2263_s3 + $0x78] sm:$0xff] (!%p1402_p6)   ;;  %v1742_v38 = vld [vmem:[%s2047_s27] sm:$0xff] (!%p1402_p6)  }
 0x140   : > { %v703_v47 = vadd.f32 %v640_v43, %v462_v35  ;;  %v711_v48 = vadd.f32 %v672_v44, %v470_v36  ;;  %v1559_v49 = vpop.f32.mrb[2].mxu0  ;;  %v1567_v50 = vpop.f32.mrb[2].mxu1  ;;  %1473 = vmatpush3.bf16.msra.mxu0 (!%p1402_p6), %v1739_v33  ;;  %v1741_v35 = vld [vmem:[%s2263_s3 + $0x38] sm:$0xff] (!%p1402_p6)  }
 0x141   : > { %721 = vst [vmem:[#allocation2 + $0x10] sm:$0xff] %v705_v41  ;;  %729 = vst [vmem:[#allocation2 + $0x50] sm:$0xff] %v713_v42  ;;  %v706_v51 = vadd.f32 %v1559_v49, %v465_v39  ;;  %v714_v52 = vadd.f32 %v1567_v50, %v473_v40  ;;  %v643_v53 = vpop.f32.mrb[3].mxu0  ;;  %v675_v54 = vpop.f32.mrb[3].mxu1  ;;  %1474 = vmatprep.subr.bf16.mxu0 (!%p1402_p6), %v1740_v34  ;;  %v1750_v39 = vld [vmem:[%s2265_s5] sm:$0xff] (!%p1402_p6)   ;;  %v1751_v41 = vld [vmem:[%s2265_s5 + $0x8] sm:$0xff] (!%p1402_p6)  }
 0x142   : > { %719 = vst [vmem:[#allocation2] sm:$0xff] %v703_v47  ;;  %727 = vst [vmem:[#allocation2 + $0x40] sm:$0xff] %v711_v48  ;;  %v704_v55 = vadd.f32 %v643_v53, %v463_v45  ;;  %v712_v56 = vadd.f32 %v675_v54, %v471_v46  ;;  %1572 = vmatprep.subr.bf16.mxu1 (!%p1402_p6), %v1750_v39  ;;  %v1752_v42 = vld [vmem:[%s2265_s5 + $0x10] sm:$0xff] (!%p1402_p6)   ;;  %v1743_v45 = vld [vmem:[%s2047_s27 + $0x8] sm:$0xff] (!%p1402_p6)  }
 0x143   : > { %722 = vst [vmem:[#allocation2 + $0x18] sm:$0xff] %v706_v51  ;;  %730 = vst [vmem:[#allocation2 + $0x58] sm:$0xff] %v714_v52  ;;  %1573 = vmatpush3.bf16.msra.mxu1 (!%p1402_p6), %v1750_v39  ;;  %v1753_v46 = vld [vmem:[%s2265_s5 + $0x18] sm:$0xff] (!%p1402_p6)   ;;  %v1744_v50 = vld [vmem:[%s2047_s27 + $0x10] sm:$0xff] (!%p1402_p6)  }
 0x144   : > { %720 = vst [vmem:[#allocation2 + $0x8] sm:$0xff] %v704_v55  ;;  %728 = vst [vmem:[#allocation2 + $0x48] sm:$0xff] %v712_v56  ;;  %1475 = vmatpush3.bf16.msra.mxu0 (!%p1402_p6), %v1741_v35  ;;  %1574 = vmatprep.subr.bf16.mxu1 (!%p1402_p6), %v1751_v41  ;;  %v1745_v54 = vld [vmem:[%s2047_s27 + $0x18] sm:$0xff] (!%p1402_p6)  }
 0x146   : > { %v1562_v61 = vpop.f32.mrb[4].mxu0  ;;  %v1570_v62 = vpop.f32.mrb[4].mxu1  ;;  %738 = sbr.rel (%p1402_p6) target bundleno = 830 (0x33e), region = 97 }
 0x147   : > { %v709_v1 = vadd.f32 %v1562_v61, %v468_v57  ;;  %v717_v2 = vadd.f32 %v1570_v62, %v476_v58  ;;  %v656_v3 = vpop.f32.mrb[5].mxu0  ;;  %v688_v4 = vpop.f32.mrb[5].mxu1  ;;  %1575 = vmatpush3.bf16.msra.mxu1 (!%p1402_p6), %v1751_v41  ;;  %v1746_v58 = vld [vmem:[%s2047_s27 + $0x20] sm:$0xff] (!%p1402_p6)   ;;  %v1747_v62 = vld [vmem:[%s2047_s27 + $0x28] sm:$0xff] (!%p1402_p6)  }
 0x148   : > { %v707_v7 = vadd.f32 %v656_v3, %v466_v59  ;;  %v715_v8 = vadd.f32 %v688_v4, %v474_v60  ;;  %v1563_v9 = vpop.f32.mrb[6].mxu0  ;;  %v1571_v10 = vpop.f32.mrb[6].mxu1  ;;  %v757_v36 = vld [vmem:[#allocation2 + $0x10] sm:$0xff] (!%p1402_p6)  ;;  %1576 = vmatprep.subr.bf16.mxu1 (!%p1402_p6), %v1752_v42  ;;  %v1749_v4 = vld [vmem:[%s2047_s27 + $0x38] sm:$0xff] (!%p1402_p6)  }
 0x149   : > { %725 = vst [vmem:[#allocation2 + $0x30] sm:$0xff] %v709_v1  ;;  %733 = vst [vmem:[#allocation2 + $0x70] sm:$0xff] %v717_v2  ;;  %v710_v11 = vadd.f32 %v1563_v9, %v469_v63  ;;  %v718_v12 = vadd.f32 %v1571_v10, %v477_v0  ;;  %v659_v13 = vpop.f32.mrb[7].mxu0  ;;  %v691_v14 = vpop.f32.mrb[7].mxu1  ;;  %v755_v28 = vld [vmem:[#allocation2] sm:$0xff] (!%p1402_p6)  ;;  %v765_v56 = vld [vmem:[#allocation2 + $0x50] sm:$0xff] (!%p1402_p6) }
 0x14a   : > { %723 = vst [vmem:[#allocation2 + $0x20] sm:$0xff] %v707_v7  ;;  %731 = vst [vmem:[#allocation2 + $0x60] sm:$0xff] %v715_v8  ;;  %v708_v15 = vadd.f32 %v659_v13, %v467_v5  ;;  %v716_v16 = vadd.f32 %v691_v14, %v475_v6  ;;  %v758_v37 = vld [vmem:[#allocation2 + $0x18] sm:$0xff] (!%p1402_p6)  ;;  %v763_v52 = vld [vmem:[#allocation2 + $0x40] sm:$0xff] (!%p1402_p6) }
 0x14b   : > { %726 = vst [vmem:[#allocation2 + $0x38] sm:$0xff] %v710_v11  ;;  %734 = vst [vmem:[#allocation2 + $0x78] sm:$0xff] %v718_v12  ;;  %v756_v29 = vld [vmem:[#allocation2 + $0x8] sm:$0xff] (!%p1402_p6)  ;;  %v772_v40 = vpack.c.bf16 (!%p1402_p6), %v758_v37, %v757_v36  ;;  %1577 = vmatpush3.bf16.msra.mxu1 (!%p1402_p6), %v1752_v42  ;;  %v766_v57 = vld [vmem:[#allocation2 + $0x58] sm:$0xff] (!%p1402_p6) }
 0x14c   : > { %724 = vst [vmem:[#allocation2 + $0x28] sm:$0xff] %v708_v15  ;;  %732 = vst [vmem:[#allocation2 + $0x68] sm:$0xff] %v716_v16  ;;  %v771_v30 = vpack.c.bf16 (!%p1402_p6), %v756_v29, %v755_v28  ;;  %1578 = vmatprep.subr.bf16.mxu1 (!%p1402_p6), %v1753_v46  ;;  %v764_v53 = vld [vmem:[#allocation2 + $0x48] sm:$0xff] (!%p1402_p6)  ;;  %v776_v59 = vpack.c.bf16 (!%p1402_p6), %v766_v57, %v765_v56  ;;  %v1748_v2 = vld [vmem:[%s2047_s27 + $0x30] sm:$0xff] (!%p1402_p6)  }
 0x14d   : > { %v775_v55 = vpack.c.bf16 %v764_v53, %v763_v52  ;;  %v1754_v5 = vld [vmem:[%s2265_s5 + $0x20] sm:$0xff]   ;;  %v1755_v6 = vld [vmem:[%s2265_s5 + $0x28] sm:$0xff]   ;;  %v1756_v7 = vld [vmem:[%s2265_s5 + $0x30] sm:$0xff]  }
 0x14e   : > { %994 = vmatprep.mubr.bf16.mxu0 %v771_v30  ;;  %v1757_v8 = vld [vmem:[%s2265_s5 + $0x38] sm:$0xff]   ;;  %v2154_v14 = vld [vmem:[%s2264_s4] ss:$0 sm:$0xff] }
 0x14f   : > { %995 = vmatmul.mubr.bf16.vlgmr.msra.gmra.mrb[0].mxu0 %v1742_v38  ;;  %1579 = vmatpush3.bf16.msra.mxu1 %v1753_v46 }
 0x150   : > { %1002 = vmatprep.mubr.bf16.mxu0 %v772_v40  ;;  %v761_v48 = vld [vmem:[#allocation2 + $0x30] sm:$0xff]  ;;  %1580 = vmatprep.subr.bf16.mxu1 %v1754_v5 }
 0x151   : > { %v759_v43 = vld [vmem:[#allocation2 + $0x20] sm:$0xff]  ;;  %v769_v0 = vld [vmem:[#allocation2 + $0x70] sm:$0xff] }
 0x152   : > { %v762_v49 = vld [vmem:[#allocation2 + $0x38] sm:$0xff]  ;;  %v767_v60 = vld [vmem:[#allocation2 + $0x60] sm:$0xff] }
 0x153   : > { %v760_v44 = vld [vmem:[#allocation2 + $0x28] sm:$0xff]  ;;  %v774_v51 = vpack.c.bf16 %v762_v49, %v761_v48  ;;  %v770_v1 = vld [vmem:[#allocation2 + $0x78] sm:$0xff]  ;;  %1581 = vmatpush3.bf16.msra.mxu1 %v1754_v5 }
 0x154   : > { %v773_v47 = vpack.c.bf16 %v760_v44, %v759_v43  ;;  %v768_v61 = vld [vmem:[#allocation2 + $0x68] sm:$0xff]  ;;  %v778_v3 = vpack.c.bf16 %v770_v1, %v769_v0  ;;  %1582 = vmatprep.subr.bf16.mxu1 %v1755_v6 }
 0x155   : > { %v777_v63 = vpack.c.bf16 %v768_v61, %v767_v60 }
 0x157   : > { %1003 = vmatmul.mubr.bf16.gmra.mrb[4].mxu0 %v1743_v45  ;;  %1583 = vmatpush3.bf16.msra.mxu1 %v1755_v6 }
 0x158   : > { %1010 = vmatprep.mubr.bf16.mxu0 %v773_v47  ;;  %1584 = vmatprep.subr.bf16.mxu1 %v1756_v7 }
 0x15b   : > { %1585 = vmatpush3.bf16.msra.mxu1 %v1756_v7 }
 0x15c   : > { %1586 = vmatprep.subr.bf16.mxu1 %v1757_v8 }
 0x15f   : > { %1011 = vmatmul.mubr.bf16.gmra.mrb[8].mxu0 %v1744_v50  ;;  %1587 = vmatpush3.bf16.msra.mxu1 %v1757_v8 }
 0x160   : > { %1018 = vmatprep.mubr.bf16.mxu0 %v774_v51 }
 0x167   : > { %1019 = vmatmul.mubr.bf16.gmra.mrb[12].mxu0 %v1745_v54 }
 0x168   : > { %1026 = vmatprep.mubr.bf16.mxu0 %v775_v55 }
 0x16f   : > { %1027 = vmatmul.mubr.bf16.gmra.mrb[16].mxu0 %v1746_v58 }
 0x170   : > { %1034 = vmatprep.mubr.bf16.mxu0 %v776_v59 }
 0x177   : > { %1035 = vmatmul.mubr.bf16.gmra.mrb[20].mxu0 %v1747_v62 }
 0x178   : > { %1042 = vmatprep.mubr.bf16.mxu0 %v777_v63 }
 0x17f   : > { %1043 = vmatmul.mubr.bf16.gmra.mrb[24].mxu0 %v1748_v2 }
 0x180   : > { %1050 = vmatprep.mubr.bf16.mxu0 %v778_v3 }
 0x187   : > { %1051 = vmatmul.mubr.bf16.gmra.mrb[28].mxu0 %v1749_v4 }
 0x222   : > { %v1476_v9 = vpop.f32.mrb[0].mxu0 }
 0x223   : > { %v1477_v10 = vpop.f32.mrb[1].mxu0 }
 0x224   : > { %v1478_v11 = vadd.f32 %v1477_v10, %v1476_v9  ;;  %v1479_v12 = vpop.f32.mrb[2].mxu0 }
 0x225   : > { %v1480_v13 = vpop.f32.mrb[3].mxu0 }
 0x226   : > { %v1481_v15 = vadd.f32 %v1480_v13, %v1479_v12  ;;  %v997_v16 = vadd.f32 %v1478_v11, %v2154_v14 }
 0x228   : > { %v1000_v17 = vadd.f32 %v1481_v15, %v2154_v14 }
 0x22a   : > { %v1482_v18 = vpop.f32.mrb[4].mxu0  ;;  %v1059_v19 = vpack.c.bf16 %v1000_v17, %v997_v16 }
 0x22b   : > { %v1483_v20 = vpop.f32.mrb[5].mxu0 }
 0x22c   : > { %v1484_v21 = vadd.f32 %v1483_v20, %v1482_v18  ;;  %v1485_v22 = vpop.f32.mrb[6].mxu0  ;;  %1588 = vmatprep.mubr.bf16.mxu1 %v1059_v19  ;;  %v1428_v19 = vld [vmem:[%s2266_s6] ss:$0 sm:$0xff] }
 0x22d   : > { %v1486_v23 = vpop.f32.mrb[7].mxu0 }
 0x22e   : > { %v1487_v24 = vadd.f32 %v1486_v23, %v1485_v22  ;;  %v1005_v25 = vadd.f32 %v1484_v21, %v2154_v14 }
 0x230   : > { %v1008_v26 = vadd.f32 %v1487_v24, %v2154_v14 }
 0x232   : > { %v1488_v27 = vpop.f32.mrb[8].mxu0  ;;  %v1060_v28 = vpack.c.bf16 %v1008_v26, %v1005_v25 }
 0x233   : > { %v1489_v29 = vpop.f32.mrb[9].mxu0 }
 0x234   : > { %v1490_v30 = vadd.f32 %v1489_v29, %v1488_v27  ;;  %v1491_v31 = vpop.f32.mrb[10].mxu0  ;;  %1589 = vmatmul.mubr.bf16.vlgmr.msra.gmra.mrb[0].mxu1 %v1060_v28 }
 0x235   : > { %v1492_v32 = vpop.f32.mrb[11].mxu0 }
 0x236   : > { %v1493_v33 = vadd.f32 %v1492_v32, %v1491_v31  ;;  %v1013_v34 = vadd.f32 %v1490_v30, %v2154_v14 }
 0x238   : > { %v1016_v35 = vadd.f32 %v1493_v33, %v2154_v14 }
 0x23a   : > { %v1494_v36 = vpop.f32.mrb[12].mxu0  ;;  %v1061_v37 = vpack.c.bf16 %v1016_v35, %v1013_v34 }
 0x23b   : > { %v1495_v38 = vpop.f32.mrb[13].mxu0 }
 0x23c   : > { %v1496_v39 = vadd.f32 %v1495_v38, %v1494_v36  ;;  %v1497_v40 = vpop.f32.mrb[14].mxu0  ;;  %1592 = vmatprep.mubr.bf16.mxu1 %v1061_v37 }
 0x23d   : > { %v1498_v41 = vpop.f32.mrb[15].mxu0 }
 0x23e   : > { %v1499_v42 = vadd.f32 %v1498_v41, %v1497_v40  ;;  %v1021_v43 = vadd.f32 %v1496_v39, %v2154_v14 }
 0x240   : > { %v1024_v44 = vadd.f32 %v1499_v42, %v2154_v14 }
 0x242   : > { %v1500_v45 = vpop.f32.mrb[16].mxu0  ;;  %v1062_v46 = vpack.c.bf16 %v1024_v44, %v1021_v43 }
 0x243   : > { %v1501_v47 = vpop.f32.mrb[17].mxu0 }
 0x244   : > { %v1502_v48 = vadd.f32 %v1501_v47, %v1500_v45  ;;  %v1503_v49 = vpop.f32.mrb[18].mxu0  ;;  %1593 = vmatmul.mubr.bf16.gmra.mrb[4].mxu1 %v1062_v46 }
 0x245   : > { %v1504_v50 = vpop.f32.mrb[19].mxu0 }
 0x246   : > { %v1505_v51 = vadd.f32 %v1504_v50, %v1503_v49  ;;  %v1029_v52 = vadd.f32 %v1502_v48, %v2154_v14 }
 0x248   : > { %v1032_v53 = vadd.f32 %v1505_v51, %v2154_v14 }
 0x24a   : > { %v1506_v54 = vpop.f32.mrb[20].mxu0  ;;  %v1063_v55 = vpack.c.bf16 %v1032_v53, %v1029_v52 }
 0x24b   : > { %v1507_v56 = vpop.f32.mrb[21].mxu0 }
 0x24c   : > { %v1508_v57 = vadd.f32 %v1507_v56, %v1506_v54  ;;  %v1509_v58 = vpop.f32.mrb[22].mxu0  ;;  %1596 = vmatprep.mubr.bf16.mxu1 %v1063_v55 }
 0x24d   : > { %v1510_v59 = vpop.f32.mrb[23].mxu0 }
 0x24e   : > { %v1511_v60 = vadd.f32 %v1510_v59, %v1509_v58  ;;  %v1037_v61 = vadd.f32 %v1508_v57, %v2154_v14 }
 0x250   : > { %v1040_v62 = vadd.f32 %v1511_v60, %v2154_v14 }
 0x252   : > { %v1512_v63 = vpop.f32.mrb[24].mxu0  ;;  %v1064_v0 = vpack.c.bf16 %v1040_v62, %v1037_v61 }
 0x253   : > { %v1513_v1 = vpop.f32.mrb[25].mxu0 }
 0x254   : > { %v1514_v2 = vadd.f32 %v1513_v1, %v1512_v63  ;;  %v1515_v3 = vpop.f32.mrb[26].mxu0  ;;  %1597 = vmatmul.mubr.bf16.gmra.mrb[8].mxu1 %v1064_v0 }
 0x255   : > { %v1516_v4 = vpop.f32.mrb[27].mxu0 }
 0x256   : > { %v1517_v5 = vadd.f32 %v1516_v4, %v1515_v3  ;;  %v1045_v6 = vadd.f32 %v1514_v2, %v2154_v14 }
 0x258   : > { %v1048_v7 = vadd.f32 %v1517_v5, %v2154_v14 }
 0x25a   : > { %v1518_v8 = vpop.f32.mrb[28].mxu0  ;;  %v1065_v9 = vpack.c.bf16 %v1048_v7, %v1045_v6 }
 0x25b   : > { %v1519_v10 = vpop.f32.mrb[29].mxu0 }
 0x25c   : > { %v1520_v11 = vadd.f32 %v1519_v10, %v1518_v8  ;;  %v1521_v12 = vpop.f32.mrb[30].mxu0  ;;  %1600 = vmatprep.mubr.bf16.mxu1 %v1065_v9 }
 0x25d   : > { %v1522_v13 = vpop.f32.mrb[31].mxu0 }
 0x25e   : > { %v1523_v15 = vadd.f32 %v1522_v13, %v1521_v12  ;;  %v1053_v16 = vadd.f32 %v1520_v11, %v2154_v14 }
 0x260   : > { %v1056_v17 = vadd.f32 %v1523_v15, %v2154_v14 }
 0x262   : > { %v1066_v18 = vpack.c.bf16 %v1056_v17, %v1053_v16 }
 0x264   : > { %1601 = vmatmul.mubr.bf16.gmra.mrb[12].mxu1 %v1066_v18 }
 0x307   : > { %v1590_v20 = vpop.f32.mrb[0].mxu1 }
 0x308   : > { %v1181_v21 = vadd.f32 %v1590_v20, %v1428_v19  ;;  %v1172_v22 = vpop.f32.mrb[1].mxu1 }
 0x309   : > { %v1173_v23 = vadd.f32 %v1428_v19, %v1172_v22  ;;  %v1591_v24 = vpop.f32.mrb[2].mxu1 }
 0x30a   : > { %1237 = vst [vmem:[%s2051_s14 + $0x10] sm:$0xff] %v1181_v21  ;;  %v1184_v25 = vadd.f32 %v1591_v24, %v1428_v19  ;;  %v1175_v26 = vpop.f32.mrb[3].mxu1 }
 0x30b   : > { %1235 = vst [vmem:[%s2051_s14] sm:$0xff] %v1173_v23  ;;  %v1176_v14 = vadd.f32 %v1428_v19, %v1175_v26 }
 0x30c   : > { %1238 = vst [vmem:[%s2051_s14 + $0x18] sm:$0xff] %v1184_v25 }
 0x30d   : > { %1236 = vst [vmem:[%s2051_s14 + $0x8] sm:$0xff] %v1176_v14 }
 0x317   : > { %v1594_v27 = vpop.f32.mrb[4].mxu1 }
 0x318   : > { %v1197_v28 = vadd.f32 %v1594_v27, %v1428_v19  ;;  %v1188_v29 = vpop.f32.mrb[5].mxu1 }
 0x319   : > { %v1189_v30 = vadd.f32 %v1428_v19, %v1188_v29  ;;  %v1595_v31 = vpop.f32.mrb[6].mxu1 }
 0x31a   : > { %1241 = vst [vmem:[%s2051_s14 + $0x30] sm:$0xff] %v1197_v28  ;;  %v1200_v32 = vadd.f32 %v1595_v31, %v1428_v19  ;;  %v1191_v33 = vpop.f32.mrb[7].mxu1 }
 0x31b   : > { %1239 = vst [vmem:[%s2051_s14 + $0x20] sm:$0xff] %v1189_v30  ;;  %v1192_v34 = vadd.f32 %v1428_v19, %v1191_v33 }
 0x31c   : > { %1242 = vst [vmem:[%s2051_s14 + $0x38] sm:$0xff] %v1200_v32 }
 0x31d   : > { %1240 = vst [vmem:[%s2051_s14 + $0x28] sm:$0xff] %v1192_v34 }
 0x327   : > { %v1598_v35 = vpop.f32.mrb[8].mxu1 }
 0x328   : > { %v1213_v36 = vadd.f32 %v1598_v35, %v1428_v19  ;;  %v1204_v37 = vpop.f32.mrb[9].mxu1 }
 0x329   : > { %v1205_v38 = vadd.f32 %v1428_v19, %v1204_v37  ;;  %v1599_v39 = vpop.f32.mrb[10].mxu1 }
 0x32a   : > { %1245 = vst [vmem:[%s2051_s14 + $0x50] sm:$0xff] %v1213_v36  ;;  %v1216_v40 = vadd.f32 %v1599_v39, %v1428_v19  ;;  %v1207_v41 = vpop.f32.mrb[11].mxu1 }
 0x32b   : > { %1243 = vst [vmem:[%s2051_s14 + $0x40] sm:$0xff] %v1205_v38  ;;  %v1208_v42 = vadd.f32 %v1428_v19, %v1207_v41 }
 0x32c   : > { %1246 = vst [vmem:[%s2051_s14 + $0x58] sm:$0xff] %v1216_v40 }
 0x32d   : > { %1244 = vst [vmem:[%s2051_s14 + $0x48] sm:$0xff] %v1208_v42 }
 0x337   : > { %v1602_v43 = vpop.f32.mrb[12].mxu1 }
 0x338   : > { %v1229_v44 = vadd.f32 %v1602_v43, %v1428_v19  ;;  %v1220_v45 = vpop.f32.mrb[13].mxu1 }
 0x339   : > { %v1221_v46 = vadd.f32 %v1428_v19, %v1220_v45  ;;  %v1603_v47 = vpop.f32.mrb[14].mxu1 }
 0x33a   : > { %1249 = vst [vmem:[%s2051_s14 + $0x70] sm:$0xff] %v1229_v44  ;;  %v1232_v48 = vadd.f32 %v1603_v47, %v1428_v19  ;;  %v1223_v49 = vpop.f32.mrb[15].mxu1 }
 0x33b   : > { %1247 = vst [vmem:[%s2051_s14 + $0x60] sm:$0xff] %v1221_v46  ;;  %v1224_v50 = vadd.f32 %v1428_v19, %v1223_v49 }
 0x33c   : > { %1250 = vst [vmem:[%s2051_s14 + $0x78] sm:$0xff] %v1232_v48 }
 0x33d   : > { %1248 = vst [vmem:[%s2051_s14 + $0x68] sm:$0xff] %v1224_v50 }
 0x33e PF: > { %s1443_s13 = sshll.u32 %s1856_s30, 11  ;;  %s1265_s17 = sshll.u32 %s2051_s14, 4  ;;  %s2198_s17 = int_to_ptr.vmem [resolvable:$true] %s1265_s17 }
 0x33f   : > { %s2195_s9 = scalar_lea.hbm %s2267_s7, %s1443_s13  ;;  %s2284_s22 = sand.u32 1, %s1836_s25  }
 0x340   : > { %s2202_s12 = scalar_lea.sflag [#allocation5], %s2284_s22  ;;  %s1758_s16 = scalar_lea.vmem %s2198_s17, 2048 }
 0x341   : > { %p1759_p8 = scmp.ne.s32.totalorder %s2198_s17, %s1758_s16  ;;  %s1871_s30 = smov [#allocation4]  }
 0x342   : > { %s1762_s27 = sshll.u32 %s1871_s30, 4  ;;  %s1763_s27 = int_to_ptr.vmem [resolvable:$false] %s1762_s27 }
 0x343   : > { %p1760_p9 = pnand %p1759_p8, %p1986_p7  ;;  %s1764_s20 = scalar_lea.vmem %s1763_s27, 4096 }
 0x344   : > { %p1765_p11 = scmp.lt.s32.totalorder %s2198_s17, %s1763_s27  ;;  %p1766_p13 = scmp.lt.s32.totalorder %s1764_s20, %s1758_s16 }
 0x345   : > { %p1761_p10 = pneg %p1760_p9 }
 0x346   : > { %p1767_p0 = por %p1766_p13, %p1765_p11 }
 0x348   : > { %p1768_p1 = pnand %p1767_p0, %p1761_p10 }
 0x34a   : > { %1771 = shalt.err (!%p1768_p1)
}
 0x34b   : > { %s1772_s14 = scalar_lea.hbm %s2195_s9, 2048  ;;  %s1776_s18 = scalar_lea.hbm %s2267_s7, 4096 }
 0x34c   : > { %p1773_p2 = scmp.ne.s32.totalorder %s2195_s9, %s1772_s14  ;;  %p1777_p5 = scmp.lt.u32.totalorder %s2195_s9, %s2267_s7 }
 0x34d   : > { %p1778_p6 = scmp.lt.u32.totalorder %s1776_s18, %s1772_s14  ;;  %p1780_p9 = scmp.lt.u32.totalorder %s1772_s14, %s2195_s9 }
 0x34e   : > { %p1774_p3 = pnand %p1773_p2, %p1986_p7 }
 0x34f   : > { %p1779_p8 = por %p1778_p6, %p1777_p5 }
 0x350   : > { %p1775_p4 = pneg %p1774_p3 }
 0x351   : > { %p1781_p10 = por %p1780_p9, %p1779_p8 }
 0x353   : > { %p1782_p11 = pnand %p1781_p10, %p1775_p4 }
 0x355   : > { %1785 = shalt.err (!%p1782_p11)
}
 0x356   : > { %s1872_s0 = smov 128   ;;  %s1873_s8 = smov 8  }
 0x357   : > { %1620 = dma.vmem_to_hbm [thread:$0]  (%p1986_p7), %s2198_s17, 2048, %s2195_s9, %s2202_s12, %s1872_s0, %s1872_s0, %s1873_s8  }
 0x358 PF: > { %p1626_p13 = scmp.ge.s32.totalorder %s1868_s10, 2  ;;  %s1280_s16 = sand.u32 1, %s1832_s24  }
 0x359   : > { %s1281_s30 = scalar_lea.sflag [#allocation5], %s1280_s16 }
 0x35a   : > { %p1623_p0 = pnand %p1626_p13, %p1994_p12 }
 0x35c   : > { %1827 = dma.done.wait (!%p1623_p0), %s1281_s30, 2048  }
 0x35d   : > { %1829 = vsyncadd (!%p1623_p0), %s1281_s30, 4294965248  ;;  %s20_s10 = sadd.s32 1, %s1868_s10   ;;  %s2286_s29 = sld [smem:[#allocation7_spill]] }
 0x35e   : > { %p17_p1 = scmp.ge.s32.totalorder %s20_s10, 6   ;;  %s2287_s30 = sld [smem:[#allocation8_spill]] }
 0x35f   : > { %s2288_s8 = sld [smem:[#allocation9_spill]]  ;;  %s2289_s9 = sld [smem:[#allocation10_spill]] }
 0x360   : > { %s2290_s24 = smov %s1836_s25  ;;  %s2291_s25 = smov %s1840_s26 }
 0x361   : > { %s2292_s26 = smov %s1999_s23  ;;  %s2293_s27 = smov %s1848_s28 }
 0x362   : > { %s2294_s28 = smov %s2002_s11  ;;  %19 = sbr.rel (!%p17_p1) target bundleno = 8 (0x8), region = 143 }
 0x369   :  { %1286 = vsyncpa [#allocation5], 1 }
 0x36a   :  { %1288 = vsyncpa [#allocation5 + $0x1], 1 }

</bundles_post_ra>
